<compile_context>
chip_gen: v6e
topology: v6e:2x2x1
jax: 0.10.0
libtpu: 0.0.40
codegen_flags: <defaults>
</compile_context>

<pallas_src>
import functools

import jax
import jax.numpy as jnp
import numpy as np
from jax import lax
from jax.experimental import pallas as pl
from jax.experimental.pallas import tpu as pltpu

EPS = 1e-5


def ftcn_kernel(
    x_ref,      # (1, Cin, Tt)  f32   input / residual tile
    bias1_ref,  # (1, Cc, 1)    f32   spk_emb @ w1s^T + b1   (per batch)
    w1x_ref,    # (Cc, Cin)     bf16  1x1 conv #1 weight (input part)
    g1_ref,     # (Cc, 1)       f32   gLN #1 gamma
    be1_ref,    # (Cc, 1)       f32   gLN #1 beta
    wdw_ref,    # (Cc, K)       f32   depthwise conv weight
    bdw_ref,    # (Cc, 1)       f32
    g2_ref,     # (Cc, 1)       f32
    be2_ref,    # (Cc, 1)       f32
    w3_ref,     # (Cin, Cc)     bf16  1x1 conv #3 weight
    b3_ref,     # (Cin, 1)      f32
    a1_ref,     # SMEM (1,)     f32   PReLU #1 slope
    a2_ref,     # SMEM (1,)     f32   PReLU #2 slope
    out_ref,    # (1, Cin, Tt)
    ybuf,       # VMEM (Cc, T + 2*halo) slab_dtype  post-conv1 activations (+halo)
    y2buf,      # VMEM (Cc, T)          slab_dtype  post-dwconv activations
    s1, q1,     # VMEM (Cc, 1) f32  gLN #1 per-channel sum / sumsq
    s2, q2,     # VMEM (Cc, 1) f32  gLN #2 per-channel sum / sumsq
    *,
    kernel_size,
    dilation,
    padding,
    halo,
    t_tile,
    t_total,
):
    p = pl.program_id(1)          # sweep: 0 conv1, 1 norm1, 2 dwconv, 3 conv3
    t = pl.program_id(2)          # T tile index
    cc = g1_ref.shape[0]
    tt = t_tile
    n_total = cc * t_total
    base = pl.multiple_of(halo + t * tt, 128)   # slab column of this tile

    ones = jnp.ones((tt, 1), jnp.float32)       # MXU ones-dot column

    def fold_gln(s_ref, q_ref, g_ref, b_ref):
        # gLN folded into per-channel scale/shift from f32 per-channel partials.
        mean = jnp.sum(s_ref[...]) / n_total
        ex2 = jnp.sum(q_ref[...]) / n_total
        var = jnp.maximum(ex2 - mean * mean, 0.0)
        inv = lax.rsqrt(var + EPS)
        scale = g_ref[...] * inv
        shift = b_ref[...] - g_ref[...] * (mean * inv)
        return scale, shift

    # ---- Sweep 0: 1x1 conv #1 (bf16 MXU) + PReLU -> slab; accumulate stats #1.
    @pl.when(p == 0)
    def _():
        @pl.when(t == 0)
        def _():
            s1[...] = jnp.zeros_like(s1)
            q1[...] = jnp.zeros_like(q1)
            s2[...] = jnp.zeros_like(s2)
            q2[...] = jnp.zeros_like(q2)
            if halo > 0:
                # Zero the conv 'same'-padding margins once per batch item.
                ybuf[:, :halo] = jnp.zeros((cc, halo), ybuf.dtype)
                ybuf[:, halo + t_total:2 * halo + t_total] = jnp.zeros(
                    (cc, halo), ybuf.dtype)

        x = x_ref[0]                                            # (Cin, Tt) f32
        y = jnp.dot(w1x_ref[...], x.astype(jnp.bfloat16),
                    preferred_element_type=jnp.float32)         # (Cc, Tt) f32
        y = y + bias1_ref[0]                                    # spk emb folded
        a1 = a1_ref[0]
        y = jnp.where(y >= 0, y, a1 * y)                        # PReLU #1
        ybuf[:, pl.ds(base, tt)] = y.astype(ybuf.dtype)
        # Per-channel partial sums via MXU ones-dot, accumulated in f32.
        s1[...] += jnp.dot(y, ones, preferred_element_type=jnp.float32)
        q1[...] += jnp.dot(y * y, ones, preferred_element_type=jnp.float32)

    # ---- Sweep 1: gLN #1 in place on the slab (halo columns stay zero).
    @pl.when(p == 1)
    def _():
        scale, shift = fold_gln(s1, q1, g1_ref, be1_ref)
        yt = ybuf[:, pl.ds(base, tt)].astype(jnp.float32)
        ybuf[:, pl.ds(base, tt)] = (yt * scale + shift).astype(ybuf.dtype)

    # ---- Sweep 2: depthwise dilated conv (halo'd static taps) + PReLU; stats #2.
    @pl.when(p == 2)
    def _():
        win_start = pl.multiple_of(t * tt, 128)
        win = ybuf[:, pl.ds(win_start, tt + 2 * halo)].astype(jnp.float32)
        wdw = wdw_ref[...]                                      # (Cc, K) f32
        acc = jnp.zeros((cc, tt), jnp.float32)
        for k in range(kernel_size):                            # static unroll
            off = halo - padding + k * dilation                 # static offset
            acc = acc + win[:, off:off + tt] * wdw[:, k:k + 1]
        y = acc + bdw_ref[...]
        a2 = a2_ref[0]
        y = jnp.where(y >= 0, y, a2 * y)                        # PReLU #2
        y2buf[:, pl.ds(pl.multiple_of(t * tt, 128), tt)] = y.astype(y2buf.dtype)
        s2[...] += jnp.dot(y, ones, preferred_element_type=jnp.float32)
        q2[...] += jnp.dot(y * y, ones, preferred_element_type=jnp.float32)

    # ---- Sweep 3: gLN #2 + 1x1 conv #3 (bf16 MXU) + residual -> out tile.
    @pl.when(p == 3)
    def _():
        scale, shift = fold_gln(s2, q2, g2_ref, be2_ref)
        z = y2buf[:, pl.ds(pl.multiple_of(t * tt, 128), tt)].astype(jnp.float32)
        z = z * scale + shift
        o = jnp.dot(w3_ref[...], z.astype(jnp.bfloat16),
                    preferred_element_type=jnp.float32)         # (Cin, Tt)
        o = o + b3_ref[...] + x_ref[0]                          # bias + residual
        out_ref[0] = o.astype(out_ref.dtype)


def ftcn_block(x, spk_emb, params, *, kernel_size, dilation, t_tile=1024,
               slab_dtype=jnp.bfloat16):
    """x: (B, Cin, T) f32 NCL, spk_emb: (B, S) -> (B, Cin, T).

    slab_dtype: dtype of the persistent (Cc, T) VMEM intermediates.  bf16 is
    right for v6e/v7x (halves slab VMEM); use jnp.float32 on v5e.
    """
    B, Cin, T = x.shape
    Cc, K = params["wdw"].shape
    assert K == kernel_size
    pad = dilation * (kernel_size - 1) // 2
    t_tile = min(t_tile, T)
    assert T % t_tile == 0 and t_tile % 128 == 0, "T / t_tile must be *128"
    n_t = T // t_tile
    halo = 0 if pad == 0 else pl.cdiv(pad, 128) * 128   # lane-aligned halo

    # Fold the speaker embedding + conv1 bias into a per-batch per-channel bias:
    # conv1(concat(x, spk)) == w1_x @ x + (w1_s @ spk + b1).
    bias1 = (spk_emb @ params["w1s"].T + params["b1"][:, 0][None, :])[:, :, None]

    full2d = lambda b, p, t: (0, 0)
    smem = pl.BlockSpec(memory_space=pltpu.MemorySpace.SMEM)
    n_sweeps = 4
    last = n_sweeps - 1

    # x is only read on sweeps 0 and 3, out only written on sweep 3: freeze the
    # block index on the other sweeps so the sweep axis does not re-DMA them.
    x_map = lambda b, p, t: (b, 0, jnp.where((p == 0) | (p == last), t, 0))
    out_map = lambda b, p, t: (b, 0, jnp.where(p == last, t, 0))

    kernel = functools.partial(
        ftcn_kernel, kernel_size=kernel_size, dilation=dilation, padding=pad,
        halo=halo, t_tile=t_tile, t_total=T)

    return pl.pallas_call(
        kernel,
        out_shape=jax.ShapeDtypeStruct((B, Cin, T), x.dtype),
        grid_spec=pltpu.PrefetchScalarGridSpec(
            num_scalar_prefetch=0,
            grid=(B, n_sweeps, n_t),
            in_specs=[
                pl.BlockSpec((1, Cin, t_tile), x_map),               # x
                pl.BlockSpec((1, Cc, 1), lambda b, p, t: (b, 0, 0)),  # bias1
                pl.BlockSpec((Cc, Cin), full2d),                     # w1x (bf16)
                pl.BlockSpec((Cc, 1), full2d),                       # gamma1
                pl.BlockSpec((Cc, 1), full2d),                       # beta1
                pl.BlockSpec((Cc, K), full2d),                       # w_dw
                pl.BlockSpec((Cc, 1), full2d),                       # b_dw
                pl.BlockSpec((Cc, 1), full2d),                       # gamma2
                pl.BlockSpec((Cc, 1), full2d),                       # beta2
                pl.BlockSpec((Cin, Cc), full2d),                     # w3 (bf16)
                pl.BlockSpec((Cin, 1), full2d),                      # b3
                smem,                                                # prelu a1
                smem,                                                # prelu a2
            ],
            out_specs=pl.BlockSpec((1, Cin, t_tile), out_map),
            scratch_shapes=[
                pltpu.VMEM((Cc, T + 2 * halo), slab_dtype),   # ybuf (+ halo)
                pltpu.VMEM((Cc, T), slab_dtype),              # y2buf
                pltpu.VMEM((Cc, 1), jnp.float32),             # s1
                pltpu.VMEM((Cc, 1), jnp.float32),             # q1
                pltpu.VMEM((Cc, 1), jnp.float32),             # s2
                pltpu.VMEM((Cc, 1), jnp.float32),             # q2
            ]),
        compiler_params=pltpu.CompilerParams(
            dimension_semantics=("parallel", "arbitrary", "arbitrary"),
            vmem_limit_bytes=64 * 1024 * 1024,
        ),
    )(
        x, bias1,
        params["w1x"], params["g1"], params["be1"],
        params["wdw"], params["bdw"], params["g2"], params["be2"],
        params["w3"], params["b3"],
        params["a1"], params["a2"],
    )


def ftcn_reference(x, spk_emb, params, *, kernel_size, dilation):
    """Pure-JAX f32 reference mirroring the PyTorch forward (NCL layout)."""
    B, Cin, T = x.shape
    S = spk_emb.shape[1]
    pad = dilation * (kernel_size - 1) // 2

    def gln(y, g, b):
        m = jnp.mean(y, axis=(1, 2), keepdims=True)
        v = jnp.mean((y - m) ** 2, axis=(1, 2), keepdims=True)
        return g[None] * (y - m) / jnp.sqrt(v + EPS) + b[None]

    w1x = params["w1x"].astype(jnp.float32)
    w3 = params["w3"].astype(jnp.float32)

    spk = jnp.broadcast_to(spk_emb[:, :, None], (B, S, T))
    inpt = jnp.concatenate([x, spk], axis=1)                     # (B, Cin+S, T)
    w1 = jnp.concatenate([w1x, params["w1s"]], axis=1)           # (Cc, Cin+S)

    y = jnp.einsum("oc,bct->bot", w1, inpt) + params["b1"][None]
    y = jnp.where(y >= 0, y, params["a1"][0] * y)
    y = gln(y, params["g1"], params["be1"])

    padded = jnp.pad(y, ((0, 0), (0, 0), (pad, pad)))
    acc = jnp.zeros_like(y)
    for k in range(kernel_size):
        off = k * dilation
        acc = acc + padded[:, :, off:off + T] * params["wdw"][None, :, k:k + 1]
    y = acc + params["bdw"][None]
    y = jnp.where(y >= 0, y, params["a2"][0] * y)
    y = gln(y, params["g2"], params["be2"])

    y = jnp.einsum("oc,bct->bot", w3, y) + params["b3"][None]
    return y + x


if __name__ == "__main__":
    # Small config consistent with the module; T = 2 tiles of 128 so the
    # T-tiled two-phase gLN and the depthwise-conv halo path are exercised.
    B, Cin, S, Cc, K, DIL, T = 2, 16, 8, 32, 3, 2, 256

    key = jax.random.PRNGKey(0)
    ks = jax.random.split(key, 14)

    params = {
        # 1x1 conv #1 weight split into input part (bf16, MXU) + speaker part.
        "w1x": (0.1 * jax.random.normal(ks[0], (Cc, Cin), jnp.float32)
                ).astype(jnp.bfloat16),
        "w1s": 0.1 * jax.random.normal(ks[1], (Cc, S), jnp.float32),
        "b1": 0.05 * jax.random.normal(ks[2], (Cc, 1), jnp.float32),
        "a1": jnp.full((1,), 0.25, jnp.float32),      # PReLU default init
        "g1": 1.0 + 0.1 * jax.random.normal(ks[3], (Cc, 1), jnp.float32),
        "be1": 0.05 * jax.random.normal(ks[4], (Cc, 1), jnp.float32),
        "wdw": 0.1 * jax.random.normal(ks[5], (Cc, K), jnp.float32),
        "bdw": 0.05 * jax.random.normal(ks[6], (Cc, 1), jnp.float32),
        "a2": jnp.full((1,), 0.25, jnp.float32),
        "g2": 1.0 + 0.1 * jax.random.normal(ks[7], (Cc, 1), jnp.float32),
        "be2": 0.05 * jax.random.normal(ks[8], (Cc, 1), jnp.float32),
        "w3": (0.1 * jax.random.normal(ks[9], (Cin, Cc), jnp.float32)
               ).astype(jnp.bfloat16),
        "b3": 0.05 * jax.random.normal(ks[10], (Cin, 1), jnp.float32),
    }

    x = jax.random.normal(ks[11], (B, Cin, T), jnp.float32)
    spk_emb = jax.random.normal(ks[12], (B, S), jnp.float32)

    out = ftcn_block(x, spk_emb, params, kernel_size=K, dilation=DIL, t_tile=128)
    out = jax.block_until_ready(out)

    ref = ftcn_reference(x, spk_emb, params, kernel_size=K, dilation=DIL)
    assert out.shape == (B, Cin, T)
    np.testing.assert_allclose(np.asarray(out), np.asarray(ref),
                               rtol=3e-2, atol=3e-2)
    print("KERNEL_OK")
</pallas_src>

<mosaic_0001>
module attributes {stable_mosaic.version = 11 : i64} {
  func.func @ftcn_kernel(%arg0: i32, %arg1: i32, %arg2: i32, %arg3: memref<1x16x128xf32, #tpu.memory_space<vmem>>, %arg4: memref<1x32x1xf32, #tpu.memory_space<vmem>>, %arg5: memref<32x16xbf16, #tpu.memory_space<vmem>>, %arg6: memref<32x1xf32, #tpu.memory_space<vmem>>, %arg7: memref<32x1xf32, #tpu.memory_space<vmem>>, %arg8: memref<32x3xf32, #tpu.memory_space<vmem>>, %arg9: memref<32x1xf32, #tpu.memory_space<vmem>>, %arg10: memref<32x1xf32, #tpu.memory_space<vmem>>, %arg11: memref<32x1xf32, #tpu.memory_space<vmem>>, %arg12: memref<16x32xbf16, #tpu.memory_space<vmem>>, %arg13: memref<16x1xf32, #tpu.memory_space<vmem>>, %arg14: memref<1xf32, #tpu.memory_space<smem>>, %arg15: memref<1xf32, #tpu.memory_space<smem>>, %arg16: memref<1x16x128xf32, #tpu.memory_space<vmem>>, %arg17: memref<32x512xbf16, #tpu.memory_space<vmem>>, %arg18: memref<32x256xbf16, #tpu.memory_space<vmem>>, %arg19: memref<32x1xf32, #tpu.memory_space<vmem>>, %arg20: memref<32x1xf32, #tpu.memory_space<vmem>>, %arg21: memref<32x1xf32, #tpu.memory_space<vmem>>, %arg22: memref<32x1xf32, #tpu.memory_space<vmem>>) attributes {dimension_semantics = [#tpu.dimension_semantics<parallel>, #tpu.dimension_semantics<arbitrary>, #tpu.dimension_semantics<arbitrary>], iteration_bounds = array<i64: 2, 4, 2>, scalar_prefetch = 0 : i64, scratch_operands = 6 : i64, tpu.core_type = #tpu.core_type<tc>, window_params = [{transform_indices = @transform_0, window_bounds = array<i64: 1, 16, 128>}, {transform_indices = @transform_1, window_bounds = array<i64: 1, 32, 1>}, {pipeline_mode = #tpu.pipeline_mode<synchronous>, transform_indices = @transform_2, window_bounds = array<i64: 32, 16>}, {pipeline_mode = #tpu.pipeline_mode<synchronous>, transform_indices = @transform_3, window_bounds = array<i64: 32, 1>}, {pipeline_mode = #tpu.pipeline_mode<synchronous>, transform_indices = @transform_4, window_bounds = array<i64: 32, 1>}, {pipeline_mode = #tpu.pipeline_mode<synchronous>, transform_indices = @transform_5, window_bounds = array<i64: 32, 3>}, {pipeline_mode = #tpu.pipeline_mode<synchronous>, transform_indices = @transform_6, window_bounds = array<i64: 32, 1>}, {pipeline_mode = #tpu.pipeline_mode<synchronous>, transform_indices = @transform_7, window_bounds = array<i64: 32, 1>}, {pipeline_mode = #tpu.pipeline_mode<synchronous>, transform_indices = @transform_8, window_bounds = array<i64: 32, 1>}, {pipeline_mode = #tpu.pipeline_mode<synchronous>, transform_indices = @transform_9, window_bounds = array<i64: 16, 32>}, {pipeline_mode = #tpu.pipeline_mode<synchronous>, transform_indices = @transform_10, window_bounds = array<i64: 16, 1>}, {transform_indices = @transform_11, window_bounds = array<i64: 1>}, {transform_indices = @transform_12, window_bounds = array<i64: 1>}, {transform_indices = @transform_13, window_bounds = array<i64: 1, 16, 128>}]} {
    %c128_i32 = arith.constant 128 : i32
    %0 = arith.muli %arg2, %c128_i32 : i32
    %c128_i32_0 = arith.constant 128 : i32
    %1 = arith.addi %c128_i32_0, %0 : i32
    %2 = tpu.assume_multiple %1, 128 : i32
    %cst = arith.constant 1.000000e+00 : f32
    %3 = vector.broadcast %cst : f32 to vector<128x1xf32>
    %c0_i32 = arith.constant 0 : i32
    %4 = arith.cmpi eq, %arg1, %c0_i32 : i32
    %5 = arith.extui %4 : i1 to i32
    %c0_i32_1 = arith.constant 0 : i32
    %6 = arith.cmpi ne, %5, %c0_i32_1 : i32
    scf.if %6 {
      %c0_i32_5 = arith.constant 0 : i32
      %16 = arith.cmpi eq, %arg2, %c0_i32_5 : i32
      %17 = arith.extui %16 : i1 to i32
      %c0_i32_6 = arith.constant 0 : i32
      %18 = arith.cmpi ne, %17, %c0_i32_6 : i32
      scf.if %18 {
        %cst_28 = arith.constant 0.000000e+00 : f32
        %46 = vector.broadcast %cst_28 : f32 to vector<32x1xf32>
        %c0_29 = arith.constant 0 : index
        %c0_30 = arith.constant 0 : index
        %47 = vector.load %arg19[%c0_29, %c0_30] : memref<32x1xf32, #tpu.memory_space<vmem>>, vector<32x1xf32>
        tpu.vector_store %arg19[%c0_29, %c0_30], %46 {strides = array<i32>} : memref<32x1xf32, #tpu.memory_space<vmem>>, vector<32x1xf32>,
        %cst_31 = arith.constant 0.000000e+00 : f32
        %48 = vector.broadcast %cst_31 : f32 to vector<32x1xf32>
        %c0_32 = arith.constant 0 : index
        %c0_33 = arith.constant 0 : index
        %49 = vector.load %arg20[%c0_32, %c0_33] : memref<32x1xf32, #tpu.memory_space<vmem>>, vector<32x1xf32>
        tpu.vector_store %arg20[%c0_32, %c0_33], %48 {strides = array<i32>} : memref<32x1xf32, #tpu.memory_space<vmem>>, vector<32x1xf32>,
        %cst_34 = arith.constant 0.000000e+00 : f32
        %50 = vector.broadcast %cst_34 : f32 to vector<32x1xf32>
        %c0_35 = arith.constant 0 : index
        %c0_36 = arith.constant 0 : index
        %51 = vector.load %arg21[%c0_35, %c0_36] : memref<32x1xf32, #tpu.memory_space<vmem>>, vector<32x1xf32>
        tpu.vector_store %arg21[%c0_35, %c0_36], %50 {strides = array<i32>} : memref<32x1xf32, #tpu.memory_space<vmem>>, vector<32x1xf32>,
        %cst_37 = arith.constant 0.000000e+00 : f32
        %52 = vector.broadcast %cst_37 : f32 to vector<32x1xf32>
        %c0_38 = arith.constant 0 : index
        %c0_39 = arith.constant 0 : index
        %53 = vector.load %arg22[%c0_38, %c0_39] : memref<32x1xf32, #tpu.memory_space<vmem>>, vector<32x1xf32>
        tpu.vector_store %arg22[%c0_38, %c0_39], %52 {strides = array<i32>} : memref<32x1xf32, #tpu.memory_space<vmem>>, vector<32x1xf32>,
        %cst_40 = arith.constant 0.000000e+00 : bf16
        %54 = vector.broadcast %cst_40 : bf16 to vector<32x128xbf16>
        %c0_41 = arith.constant 0 : index
        %c0_42 = arith.constant 0 : index
        %55 = vector.load %arg17[%c0_41, %c0_42] : memref<32x512xbf16, #tpu.memory_space<vmem>>, vector<32x128xbf16>
        tpu.vector_store %arg17[%c0_41, %c0_42], %54 {strides = array<i32>} : memref<32x512xbf16, #tpu.memory_space<vmem>>, vector<32x128xbf16>,
        %cst_43 = arith.constant 0.000000e+00 : bf16
        %56 = vector.broadcast %cst_43 : bf16 to vector<32x128xbf16>
        %c0_44 = arith.constant 0 : index
        %c384 = arith.constant 384 : index
        %57 = vector.load %arg17[%c0_44, %c384] : memref<32x512xbf16, #tpu.memory_space<vmem>>, vector<32x128xbf16>
        tpu.vector_store %arg17[%c0_44, %c384], %56 {strides = array<i32>} : memref<32x512xbf16, #tpu.memory_space<vmem>>, vector<32x128xbf16>,
      } else {
      }
      %c0 = arith.constant 0 : index
      %c0_7 = arith.constant 0 : index
      %c0_8 = arith.constant 0 : index
      %19 = vector.load %arg3[%c0, %c0_7, %c0_8] : memref<1x16x128xf32, #tpu.memory_space<vmem>>, vector<1x16x128xf32>
      %20 = vector.shape_cast %19 : vector<1x16x128xf32> to vector<16x128xf32>
      %c0_9 = arith.constant 0 : index
      %c0_10 = arith.constant 0 : index
      %21 = vector.load %arg5[%c0_9, %c0_10] : memref<32x16xbf16, #tpu.memory_space<vmem>>, vector<32x16xbf16>
      %22 = arith.truncf %20 : vector<16x128xf32> to vector<16x128xbf16>
      %cst_11 = arith.constant dense<0.000000e+00> : vector<32x128xf32>
      %23 = tpu.matmul %21, %22, %cst_11 {dimension_numbers = #tpu.dot_dimension_numbers<[1], [0], [0], [1], [0, 0, 1, 1], [], []>} : vector<32x16xbf16>, vector<16x128xbf16>, vector<32x128xf32> -> vector<32x128xf32>
      %c0_12 = arith.constant 0 : index
      %c0_13 = arith.constant 0 : index
      %c0_14 = arith.constant 0 : index
      %24 = vector.load %arg4[%c0_12, %c0_13, %c0_14] : memref<1x32x1xf32, #tpu.memory_space<vmem>>, vector<1x32x1xf32>
      %25 = vector.shape_cast %24 : vector<1x32x1xf32> to vector<32x1xf32>
      %26 = vector.broadcast %25 : vector<32x1xf32> to vector<32x128xf32>
      %27 = arith.addf %23, %26 : vector<32x128xf32>
      %c0_15 = arith.constant 0 : index
      %28 = memref.load %arg14[%c0_15] : memref<1xf32, #tpu.memory_space<smem>>
      %cst_16 = arith.constant 0.000000e+00 : f32
      %29 = vector.broadcast %cst_16 : f32 to vector<32x128xf32>
      %30 = arith.cmpf oge, %27, %29 : vector<32x128xf32>
      %31 = vector.broadcast %28 : f32 to vector<32x128xf32>
      %32 = arith.mulf %31, %27 : vector<32x128xf32>
      %33 = arith.select %30, %27, %32 : vector<32x128xi1>, vector<32x128xf32>
      %34 = arith.truncf %33 : vector<32x128xf32> to vector<32x128xbf16>
      %c0_17 = arith.constant 0 : index
      %35 = arith.index_cast %2 : i32 to index
      %36 = vector.load %arg17[%c0_17, %35] : memref<32x512xbf16, #tpu.memory_space<vmem>>, vector<32x128xbf16>
      tpu.vector_store %arg17[%c0_17, %35], %34 {strides = array<i32>} : memref<32x512xbf16, #tpu.memory_space<vmem>>, vector<32x128xbf16>,
      %c0_18 = arith.constant 0 : index
      %c0_19 = arith.constant 0 : index
      %37 = vector.load %arg19[%c0_18, %c0_19] : memref<32x1xf32, #tpu.memory_space<vmem>>, vector<32x1xf32>
      %cst_20 = arith.constant dense<0.000000e+00> : vector<32x1xf32>
      %38 = tpu.matmul %33, %3, %cst_20 {dimension_numbers = #tpu.dot_dimension_numbers<[1], [0], [0], [1], [0, 0, 1, 1], [], []>} : vector<32x128xf32>, vector<128x1xf32>, vector<32x1xf32> -> vector<32x1xf32>
      %39 = arith.addf %37, %38 : vector<32x1xf32>
      %c0_21 = arith.constant 0 : index
      %c0_22 = arith.constant 0 : index
      %40 = vector.load %arg19[%c0_21, %c0_22] : memref<32x1xf32, #tpu.memory_space<vmem>>, vector<32x1xf32>
      tpu.vector_store %arg19[%c0_21, %c0_22], %39 {strides = array<i32>} : memref<32x1xf32, #tpu.memory_space<vmem>>, vector<32x1xf32>,
      %c0_23 = arith.constant 0 : index
      %c0_24 = arith.constant 0 : index
      %41 = vector.load %arg20[%c0_23, %c0_24] : memref<32x1xf32, #tpu.memory_space<vmem>>, vector<32x1xf32>
      %42 = arith.mulf %33, %33 : vector<32x128xf32>
      %cst_25 = arith.constant dense<0.000000e+00> : vector<32x1xf32>
      %43 = tpu.matmul %42, %3, %cst_25 {dimension_numbers = #tpu.dot_dimension_numbers<[1], [0], [0], [1], [0, 0, 1, 1], [], []>} : vector<32x128xf32>, vector<128x1xf32>, vector<32x1xf32> -> vector<32x1xf32>
      %44 = arith.addf %41, %43 : vector<32x1xf32>
      %c0_26 = arith.constant 0 : index
      %c0_27 = arith.constant 0 : index
      %45 = vector.load %arg20[%c0_26, %c0_27] : memref<32x1xf32, #tpu.memory_space<vmem>>, vector<32x1xf32>
      tpu.vector_store %arg20[%c0_26, %c0_27], %44 {strides = array<i32>} : memref<32x1xf32, #tpu.memory_space<vmem>>, vector<32x1xf32>,
    } else {
    }
    %c1_i32 = arith.constant 1 : i32
    %7 = arith.cmpi eq, %arg1, %c1_i32 : i32
    %8 = arith.extui %7 : i1 to i32
    %c0_i32_2 = arith.constant 0 : i32
    %9 = arith.cmpi ne, %8, %c0_i32_2 : i32
    scf.if %9 {
      %c0 = arith.constant 0 : index
      %c0_5 = arith.constant 0 : index
      %16 = vector.load %arg19[%c0, %c0_5] : memref<32x1xf32, #tpu.memory_space<vmem>>, vector<32x1xf32>
      %17 = vector.shape_cast %16 : vector<32x1xf32> to vector<1x32x1xf32>
      %cst_6 = arith.constant dense<0.000000e+00> : vector<1xf32>
      %18 = vector.multi_reduction <add>, %17, %cst_6 [1, 2] : vector<1x32x1xf32> to vector<1xf32>
      %19 = vector.shape_cast %18 : vector<1xf32> to vector<1x1x1xf32>
      %20 = vector.extract %19[0, 0, 0] : f32 from vector<1x1x1xf32>
      %cst_7 = arith.constant 8.192000e+03 : f32
      %21 = arith.divf %20, %cst_7 : f32
      %c0_8 = arith.constant 0 : index
      %c0_9 = arith.constant 0 : index
      %22 = vector.load %arg20[%c0_8, %c0_9] : memref<32x1xf32, #tpu.memory_space<vmem>>, vector<32x1xf32>
      %23 = vector.shape_cast %22 : vector<32x1xf32> to vector<1x32x1xf32>
      %cst_10 = arith.constant dense<0.000000e+00> : vector<1xf32>
      %24 = vector.multi_reduction <add>, %23, %cst_10 [1, 2] : vector<1x32x1xf32> to vector<1xf32>
      %25 = vector.shape_cast %24 : vector<1xf32> to vector<1x1x1xf32>
      %26 = vector.extract %25[0, 0, 0] : f32 from vector<1x1x1xf32>
      %cst_11 = arith.constant 8.192000e+03 : f32
      %27 = arith.divf %26, %cst_11 : f32
      %28 = arith.mulf %21, %21 : f32
      %29 = arith.subf %27, %28 : f32
      %cst_12 = arith.constant 0.000000e+00 : f32
      %30 = arith.maximumf %29, %cst_12 : f32
      %cst_13 = arith.constant 9.99999974E-6 : f32
      %31 = arith.addf %30, %cst_13 : f32
      %32 = math.rsqrt %31 : f32
      %c0_14 = arith.constant 0 : index
      %c0_15 = arith.constant 0 : index
      %33 = vector.load %arg6[%c0_14, %c0_15] : memref<32x1xf32, #tpu.memory_space<vmem>>, vector<32x1xf32>
      %34 = vector.broadcast %32 : f32 to vector<32x1xf32>
      %35 = arith.mulf %33, %34 : vector<32x1xf32>
      %c0_16 = arith.constant 0 : index
      %c0_17 = arith.constant 0 : index
      %36 = vector.load %arg7[%c0_16, %c0_17] : memref<32x1xf32, #tpu.memory_space<vmem>>, vector<32x1xf32>
      %c0_18 = arith.constant 0 : index
      %c0_19 = arith.constant 0 : index
      %37 = vector.load %arg6[%c0_18, %c0_19] : memref<32x1xf32, #tpu.memory_space<vmem>>, vector<32x1xf32>
      %38 = arith.mulf %21, %32 : f32
      %39 = vector.broadcast %38 : f32 to vector<32x1xf32>
      %40 = arith.mulf %37, %39 : vector<32x1xf32>
      %41 = arith.subf %36, %40 : vector<32x1xf32>
      %c0_20 = arith.constant 0 : index
      %42 = arith.index_cast %2 : i32 to index
      %43 = vector.load %arg17[%c0_20, %42] : memref<32x512xbf16, #tpu.memory_space<vmem>>, vector<32x128xbf16>
      %44 = arith.extf %43 : vector<32x128xbf16> to vector<32x128xf32>
      %45 = vector.broadcast %35 : vector<32x1xf32> to vector<32x128xf32>
      %46 = arith.mulf %44, %45 : vector<32x128xf32>
      %47 = vector.broadcast %41 : vector<32x1xf32> to vector<32x128xf32>
      %48 = arith.addf %46, %47 : vector<32x128xf32>
      %49 = arith.truncf %48 : vector<32x128xf32> to vector<32x128xbf16>
      %c0_21 = arith.constant 0 : index
      %50 = arith.index_cast %2 : i32 to index
      %51 = vector.load %arg17[%c0_21, %50] : memref<32x512xbf16, #tpu.memory_space<vmem>>, vector<32x128xbf16>
      tpu.vector_store %arg17[%c0_21, %50], %49 {strides = array<i32>} : memref<32x512xbf16, #tpu.memory_space<vmem>>, vector<32x128xbf16>,
    } else {
    }
    %c2_i32 = arith.constant 2 : i32
    %10 = arith.cmpi eq, %arg1, %c2_i32 : i32
    %11 = arith.extui %10 : i1 to i32
    %c0_i32_3 = arith.constant 0 : i32
    %12 = arith.cmpi ne, %11, %c0_i32_3 : i32
    scf.if %12 {
      %c128_i32_5 = arith.constant 128 : i32
      %16 = arith.muli %arg2, %c128_i32_5 : i32
      %17 = tpu.assume_multiple %16, 128 : i32
      %c0 = arith.constant 0 : index
      %18 = arith.index_cast %17 : i32 to index
      %19 = vector.load %arg17[%c0, %18] : memref<32x512xbf16, #tpu.memory_space<vmem>>, vector<32x384xbf16>
      %20 = arith.extf %19 : vector<32x384xbf16> to vector<32x384xf32>
      %c0_6 = arith.constant 0 : index
      %c0_7 = arith.constant 0 : index
      %21 = vector.load %arg8[%c0_6, %c0_7] : memref<32x3xf32, #tpu.memory_space<vmem>>, vector<32x3xf32>
      %cst_8 = arith.constant 0.000000e+00 : f32
      %22 = vector.broadcast %cst_8 : f32 to vector<32x128xf32>
      %23 = vector.extract_strided_slice %20 {offsets = [0, 126], sizes = [32, 128], strides = [1, 1]} : vector<32x384xf32> to vector<32x128xf32>
      %24 = vector.extract_strided_slice %21 {offsets = [0, 0], sizes = [32, 1], strides = [1, 1]} : vector<32x3xf32> to vector<32x1xf32>
      %25 = vector.broadcast %24 : vector<32x1xf32> to vector<32x128xf32>
      %26 = arith.mulf %23, %25 : vector<32x128xf32>
      %27 = arith.addf %22, %26 : vector<32x128xf32>
      %28 = vector.extract_strided_slice %20 {offsets = [0, 128], sizes = [32, 128], strides = [1, 1]} : vector<32x384xf32> to vector<32x128xf32>
      %29 = vector.extract_strided_slice %21 {offsets = [0, 1], sizes = [32, 1], strides = [1, 1]} : vector<32x3xf32> to vector<32x1xf32>
      %30 = vector.broadcast %29 : vector<32x1xf32> to vector<32x128xf32>
      %31 = arith.mulf %28, %30 : vector<32x128xf32>
      %32 = arith.addf %27, %31 : vector<32x128xf32>
      %33 = vector.extract_strided_slice %20 {offsets = [0, 130], sizes = [32, 128], strides = [1, 1]} : vector<32x384xf32> to vector<32x128xf32>
      %34 = vector.extract_strided_slice %21 {offsets = [0, 2], sizes = [32, 1], strides = [1, 1]} : vector<32x3xf32> to vector<32x1xf32>
      %35 = vector.broadcast %34 : vector<32x1xf32> to vector<32x128xf32>
      %36 = arith.mulf %33, %35 : vector<32x128xf32>
      %37 = arith.addf %32, %36 : vector<32x128xf32>
      %c0_9 = arith.constant 0 : index
      %c0_10 = arith.constant 0 : index
      %38 = vector.load %arg9[%c0_9, %c0_10] : memref<32x1xf32, #tpu.memory_space<vmem>>, vector<32x1xf32>
      %39 = vector.broadcast %38 : vector<32x1xf32> to vector<32x128xf32>
      %40 = arith.addf %37, %39 : vector<32x128xf32>
      %c0_11 = arith.constant 0 : index
      %41 = memref.load %arg15[%c0_11] : memref<1xf32, #tpu.memory_space<smem>>
      %cst_12 = arith.constant 0.000000e+00 : f32
      %42 = vector.broadcast %cst_12 : f32 to vector<32x128xf32>
      %43 = arith.cmpf oge, %40, %42 : vector<32x128xf32>
      %44 = vector.broadcast %41 : f32 to vector<32x128xf32>
      %45 = arith.mulf %44, %40 : vector<32x128xf32>
      %46 = arith.select %43, %40, %45 : vector<32x128xi1>, vector<32x128xf32>
      %47 = arith.truncf %46 : vector<32x128xf32> to vector<32x128xbf16>
      %c128_i32_13 = arith.constant 128 : i32
      %48 = arith.muli %arg2, %c128_i32_13 : i32
      %49 = tpu.assume_multiple %48, 128 : i32
      %c0_14 = arith.constant 0 : index
      %50 = arith.index_cast %49 : i32 to index
      %51 = vector.load %arg18[%c0_14, %50] : memref<32x256xbf16, #tpu.memory_space<vmem>>, vector<32x128xbf16>
      tpu.vector_store %arg18[%c0_14, %50], %47 {strides = array<i32>} : memref<32x256xbf16, #tpu.memory_space<vmem>>, vector<32x128xbf16>,
      %c0_15 = arith.constant 0 : index
      %c0_16 = arith.constant 0 : index
      %52 = vector.load %arg21[%c0_15, %c0_16] : memref<32x1xf32, #tpu.memory_space<vmem>>, vector<32x1xf32>
      %cst_17 = arith.constant dense<0.000000e+00> : vector<32x1xf32>
      %53 = tpu.matmul %46, %3, %cst_17 {dimension_numbers = #tpu.dot_dimension_numbers<[1], [0], [0], [1], [0, 0, 1, 1], [], []>} : vector<32x128xf32>, vector<128x1xf32>, vector<32x1xf32> -> vector<32x1xf32>
      %54 = arith.addf %52, %53 : vector<32x1xf32>
      %c0_18 = arith.constant 0 : index
      %c0_19 = arith.constant 0 : index
      %55 = vector.load %arg21[%c0_18, %c0_19] : memref<32x1xf32, #tpu.memory_space<vmem>>, vector<32x1xf32>
      tpu.vector_store %arg21[%c0_18, %c0_19], %54 {strides = array<i32>} : memref<32x1xf32, #tpu.memory_space<vmem>>, vector<32x1xf32>,
      %c0_20 = arith.constant 0 : index
      %c0_21 = arith.constant 0 : index
      %56 = vector.load %arg22[%c0_20, %c0_21] : memref<32x1xf32, #tpu.memory_space<vmem>>, vector<32x1xf32>
      %57 = arith.mulf %46, %46 : vector<32x128xf32>
      %cst_22 = arith.constant dense<0.000000e+00> : vector<32x1xf32>
      %58 = tpu.matmul %57, %3, %cst_22 {dimension_numbers = #tpu.dot_dimension_numbers<[1], [0], [0], [1], [0, 0, 1, 1], [], []>} : vector<32x128xf32>, vector<128x1xf32>, vector<32x1xf32> -> vector<32x1xf32>
      %59 = arith.addf %56, %58 : vector<32x1xf32>
      %c0_23 = arith.constant 0 : index
      %c0_24 = arith.constant 0 : index
      %60 = vector.load %arg22[%c0_23, %c0_24] : memref<32x1xf32, #tpu.memory_space<vmem>>, vector<32x1xf32>
      tpu.vector_store %arg22[%c0_23, %c0_24], %59 {strides = array<i32>} : memref<32x1xf32, #tpu.memory_space<vmem>>, vector<32x1xf32>,
    } else {
    }
    %c3_i32 = arith.constant 3 : i32
    %13 = arith.cmpi eq, %arg1, %c3_i32 : i32
    %14 = arith.extui %13 : i1 to i32
    %c0_i32_4 = arith.constant 0 : i32
    %15 = arith.cmpi ne, %14, %c0_i32_4 : i32
    scf.if %15 {
      %c0 = arith.constant 0 : index
      %c0_5 = arith.constant 0 : index
      %16 = vector.load %arg21[%c0, %c0_5] : memref<32x1xf32, #tpu.memory_space<vmem>>, vector<32x1xf32>
      %17 = vector.shape_cast %16 : vector<32x1xf32> to vector<1x32x1xf32>
      %cst_6 = arith.constant dense<0.000000e+00> : vector<1xf32>
      %18 = vector.multi_reduction <add>, %17, %cst_6 [1, 2] : vector<1x32x1xf32> to vector<1xf32>
      %19 = vector.shape_cast %18 : vector<1xf32> to vector<1x1x1xf32>
      %20 = vector.extract %19[0, 0, 0] : f32 from vector<1x1x1xf32>
      %cst_7 = arith.constant 8.192000e+03 : f32
      %21 = arith.divf %20, %cst_7 : f32
      %c0_8 = arith.constant 0 : index
      %c0_9 = arith.constant 0 : index
      %22 = vector.load %arg22[%c0_8, %c0_9] : memref<32x1xf32, #tpu.memory_space<vmem>>, vector<32x1xf32>
      %23 = vector.shape_cast %22 : vector<32x1xf32> to vector<1x32x1xf32>
      %cst_10 = arith.constant dense<0.000000e+00> : vector<1xf32>
      %24 = vector.multi_reduction <add>, %23, %cst_10 [1, 2] : vector<1x32x1xf32> to vector<1xf32>
      %25 = vector.shape_cast %24 : vector<1xf32> to vector<1x1x1xf32>
      %26 = vector.extract %25[0, 0, 0] : f32 from vector<1x1x1xf32>
      %cst_11 = arith.constant 8.192000e+03 : f32
      %27 = arith.divf %26, %cst_11 : f32
      %28 = arith.mulf %21, %21 : f32
      %29 = arith.subf %27, %28 : f32
      %cst_12 = arith.constant 0.000000e+00 : f32
      %30 = arith.maximumf %29, %cst_12 : f32
      %cst_13 = arith.constant 9.99999974E-6 : f32
      %31 = arith.addf %30, %cst_13 : f32
      %32 = math.rsqrt %31 : f32
      %c0_14 = arith.constant 0 : index
      %c0_15 = arith.constant 0 : index
      %33 = vector.load %arg10[%c0_14, %c0_15] : memref<32x1xf32, #tpu.memory_space<vmem>>, vector<32x1xf32>
      %34 = vector.broadcast %32 : f32 to vector<32x1xf32>
      %35 = arith.mulf %33, %34 : vector<32x1xf32>
      %c0_16 = arith.constant 0 : index
      %c0_17 = arith.constant 0 : index
      %36 = vector.load %arg11[%c0_16, %c0_17] : memref<32x1xf32, #tpu.memory_space<vmem>>, vector<32x1xf32>
      %c0_18 = arith.constant 0 : index
      %c0_19 = arith.constant 0 : index
      %37 = vector.load %arg10[%c0_18, %c0_19] : memref<32x1xf32, #tpu.memory_space<vmem>>, vector<32x1xf32>
      %38 = arith.mulf %21, %32 : f32
      %39 = vector.broadcast %38 : f32 to vector<32x1xf32>
      %40 = arith.mulf %37, %39 : vector<32x1xf32>
      %41 = arith.subf %36, %40 : vector<32x1xf32>
      %c128_i32_20 = arith.constant 128 : i32
      %42 = arith.muli %arg2, %c128_i32_20 : i32
      %43 = tpu.assume_multiple %42, 128 : i32
      %c0_21 = arith.constant 0 : index
      %44 = arith.index_cast %43 : i32 to index
      %45 = vector.load %arg18[%c0_21, %44] : memref<32x256xbf16, #tpu.memory_space<vmem>>, vector<32x128xbf16>
      %46 = arith.extf %45 : vector<32x128xbf16> to vector<32x128xf32>
      %47 = vector.broadcast %35 : vector<32x1xf32> to vector<32x128xf32>
      %48 = arith.mulf %46, %47 : vector<32x128xf32>
      %49 = vector.broadcast %41 : vector<32x1xf32> to vector<32x128xf32>
      %50 = arith.addf %48, %49 : vector<32x128xf32>
      %c0_22 = arith.constant 0 : index
      %c0_23 = arith.constant 0 : index
      %51 = vector.load %arg12[%c0_22, %c0_23] : memref<16x32xbf16, #tpu.memory_space<vmem>>, vector<16x32xbf16>
      %52 = arith.truncf %50 : vector<32x128xf32> to vector<32x128xbf16>
      %cst_24 = arith.constant dense<0.000000e+00> : vector<16x128xf32>
      %53 = tpu.matmul %51, %52, %cst_24 {dimension_numbers = #tpu.dot_dimension_numbers<[1], [0], [0], [1], [0, 0, 1, 1], [], []>} : vector<16x32xbf16>, vector<32x128xbf16>, vector<16x128xf32> -> vector<16x128xf32>
      %c0_25 = arith.constant 0 : index
      %c0_26 = arith.constant 0 : index
      %54 = vector.load %arg13[%c0_25, %c0_26] : memref<16x1xf32, #tpu.memory_space<vmem>>, vector<16x1xf32>
      %55 = vector.broadcast %54 : vector<16x1xf32> to vector<16x128xf32>
      %56 = arith.addf %53, %55 : vector<16x128xf32>
      %c0_27 = arith.constant 0 : index
      %c0_28 = arith.constant 0 : index
      %c0_29 = arith.constant 0 : index
      %57 = vector.load %arg3[%c0_27, %c0_28, %c0_29] : memref<1x16x128xf32, #tpu.memory_space<vmem>>, vector<1x16x128xf32>
      %58 = vector.shape_cast %57 : vector<1x16x128xf32> to vector<16x128xf32>
      %59 = arith.addf %56, %58 : vector<16x128xf32>
      %c0_30 = arith.constant 0 : index
      %c0_31 = arith.constant 0 : index
      %c0_32 = arith.constant 0 : index
      %60 = vector.load %arg16[%c0_30, %c0_31, %c0_32] : memref<1x16x128xf32, #tpu.memory_space<vmem>>, vector<1x16x128xf32>
      %61 = vector.shape_cast %60 : vector<1x16x128xf32> to vector<16x128xf32>
      %62 = vector.shape_cast %59 : vector<16x128xf32> to vector<1x16x128xf32>
      tpu.vector_store %arg16[%c0_30, %c0_31, %c0_32], %62 {strides = array<i32>} : memref<1x16x128xf32, #tpu.memory_space<vmem>>, vector<1x16x128xf32>,
    } else {
    }
    return
  }
  func.func @transform_0(%arg0: i32, %arg1: i32, %arg2: i32) -> (i32, i32, i32) {
    %c0_i32 = arith.constant 0 : i32
    %0 = arith.cmpi eq, %arg1, %c0_i32 : i32
    %c3_i32 = arith.constant 3 : i32
    %1 = arith.cmpi eq, %arg1, %c3_i32 : i32
    %2 = arith.ori %0, %1 : i1
    %c0_i32_0 = arith.constant 0 : i32
    %3 = arith.select %2, %arg2, %c0_i32_0 : i32
    %c0_i32_1 = arith.constant 0 : i32
    %c0_i32_2 = arith.constant 0 : i32
    return %arg0, %c0_i32_1, %3 : i32, i32, i32
  }
  func.func @transform_1(%arg0: i32, %arg1: i32, %arg2: i32) -> (i32, i32, i32) {
    %c0_i32 = arith.constant 0 : i32
    %c0_i32_0 = arith.constant 0 : i32
    %c0_i32_1 = arith.constant 0 : i32
    return %arg0, %c0_i32, %c0_i32_0 : i32, i32, i32
  }
  func.func @transform_2(%arg0: i32, %arg1: i32, %arg2: i32) -> (i32, i32) {
    %c0_i32 = arith.constant 0 : i32
    %c0_i32_0 = arith.constant 0 : i32
    %c0_i32_1 = arith.constant 0 : i32
    return %c0_i32, %c0_i32_0 : i32, i32
  }
  func.func @transform_3(%arg0: i32, %arg1: i32, %arg2: i32) -> (i32, i32) {
    %c0_i32 = arith.constant 0 : i32
    %c0_i32_0 = arith.constant 0 : i32
    %c0_i32_1 = arith.constant 0 : i32
    return %c0_i32, %c0_i32_0 : i32, i32
  }
  func.func @transform_4(%arg0: i32, %arg1: i32, %arg2: i32) -> (i32, i32) {
    %c0_i32 = arith.constant 0 : i32
    %c0_i32_0 = arith.constant 0 : i32
    %c0_i32_1 = arith.constant 0 : i32
    return %c0_i32, %c0_i32_0 : i32, i32
  }
  func.func @transform_5(%arg0: i32, %arg1: i32, %arg2: i32) -> (i32, i32) {
    %c0_i32 = arith.constant 0 : i32
    %c0_i32_0 = arith.constant 0 : i32
    %c0_i32_1 = arith.constant 0 : i32
    return %c0_i32, %c0_i32_0 : i32, i32
  }
  func.func @transform_6(%arg0: i32, %arg1: i32, %arg2: i32) -> (i32, i32) {
    %c0_i32 = arith.constant 0 : i32
    %c0_i32_0 = arith.constant 0 : i32
    %c0_i32_1 = arith.constant 0 : i32
    return %c0_i32, %c0_i32_0 : i32, i32
  }
  func.func @transform_7(%arg0: i32, %arg1: i32, %arg2: i32) -> (i32, i32) {
    %c0_i32 = arith.constant 0 : i32
    %c0_i32_0 = arith.constant 0 : i32
    %c0_i32_1 = arith.constant 0 : i32
    return %c0_i32, %c0_i32_0 : i32, i32
  }
  func.func @transform_8(%arg0: i32, %arg1: i32, %arg2: i32) -> (i32, i32) {
    %c0_i32 = arith.constant 0 : i32
    %c0_i32_0 = arith.constant 0 : i32
    %c0_i32_1 = arith.constant 0 : i32
    return %c0_i32, %c0_i32_0 : i32, i32
  }
  func.func @transform_9(%arg0: i32, %arg1: i32, %arg2: i32) -> (i32, i32) {
    %c0_i32 = arith.constant 0 : i32
    %c0_i32_0 = arith.constant 0 : i32
    %c0_i32_1 = arith.constant 0 : i32
    return %c0_i32, %c0_i32_0 : i32, i32
  }
  func.func @transform_10(%arg0: i32, %arg1: i32, %arg2: i32) -> (i32, i32) {
    %c0_i32 = arith.constant 0 : i32
    %c0_i32_0 = arith.constant 0 : i32
    %c0_i32_1 = arith.constant 0 : i32
    return %c0_i32, %c0_i32_0 : i32, i32
  }
  func.func @transform_11(%arg0: i32, %arg1: i32, %arg2: i32) -> i32 {
    %c0_i32 = arith.constant 0 : i32
    %c0_i32_0 = arith.constant 0 : i32
    return %c0_i32 : i32
  }
  func.func @transform_12(%arg0: i32, %arg1: i32, %arg2: i32) -> i32 {
    %c0_i32 = arith.constant 0 : i32
    %c0_i32_0 = arith.constant 0 : i32
    return %c0_i32 : i32
  }
  func.func @transform_13(%arg0: i32, %arg1: i32, %arg2: i32) -> (i32, i32, i32) {
    %c3_i32 = arith.constant 3 : i32
    %0 = arith.cmpi eq, %arg1, %c3_i32 : i32
    %c0_i32 = arith.constant 0 : i32
    %1 = arith.select %0, %arg2, %c0_i32 : i32
    %c0_i32_0 = arith.constant 0 : i32
    %c0_i32_1 = arith.constant 0 : i32
    return %arg0, %c0_i32_0, %1 : i32, i32, i32
  }
}

</mosaic_0001>

<bundles_post_ra>
// kernel: tpu_custom_call.1
= control target key start
LH: loop header
LB: loop body
LE: loop exit
PB: predicated region body
PF: predicated region fallthrough
CT: control target
= control target key end

     0   :  { %s3349_s0 = inlined_call_operand.vmem [shape: f32[2,16,256], index: 0, kind: input, shape index: {}]   ;;  %s3350_s1 = inlined_call_operand.vmem [shape: f32[2,32,1], index: 1, kind: input, shape index: {}]   ;;  %s3351_s2 = inlined_call_operand.vmem [shape: bf16[32,16], index: 2, kind: input, shape index: {}]   ;;  %s3352_s3 = inlined_call_operand.vmem [shape: f32[32,1], index: 3, kind: input, shape index: {}]   ;;  %s3353_s4 = inlined_call_operand.vmem [shape: f32[32,1], index: 4, kind: input, shape index: {}]   ;;  %s3354_s5 = inlined_call_operand.vmem [shape: f32[32,3], index: 5, kind: input, shape index: {}]   ;;  %s3355_s6 = inlined_call_operand.vmem [shape: f32[32,1], index: 6, kind: input, shape index: {}]   ;;  %s3356_s7 = inlined_call_operand.vmem [shape: f32[32,1], index: 7, kind: input, shape index: {}]   ;;  %s3357_s8 = inlined_call_operand.vmem [shape: f32[32,1], index: 8, kind: input, shape index: {}]   ;;  %s3358_s9 = inlined_call_operand.vmem [shape: bf16[16,32], index: 9, kind: input, shape index: {}]   ;;  %s3359_s10 = inlined_call_operand.vmem [shape: f32[16,1], index: 10, kind: input, shape index: {}]   ;;  %s3360_s11 = inlined_call_operand.<no memory space> [shape: f32[1], index: 11, kind: input, shape index: {}]   ;;  %s3361_s12 = inlined_call_operand.<no memory space> [shape: f32[1], index: 12, kind: input, shape index: {}]   ;;  %s3362_s13 = inlined_call_operand.hbm [shape: f32[2,16,256], index: 13, kind: output, shape index: {}]  }
   0x1   :  { %3384 = sst [smem:[#allocation19_spill]] %s3349_s0 }
   0x2   :  { %3385 = sst [smem:[#allocation20_spill]] %s3350_s1 }
   0x3   :  { %3386 = sst [smem:[#allocation21_spill]] %s3351_s2 }
   0x4   :  { %3387 = sst [smem:[#allocation22_spill]] %s3352_s3 }
   0x5   :  { %3388 = sst [smem:[#allocation23_spill]] %s3353_s4 }
   0x6   :  { %3389 = sst [smem:[#allocation24_spill]] %s3354_s5 }
   0x7   :  { %3390 = sst [smem:[#allocation25_spill]] %s3355_s6 }
   0x8   :  { %3391 = sst [smem:[#allocation26_spill]] %s3356_s7 }
   0x9   :  { %3392 = sst [smem:[#allocation27_spill]] %s3357_s8 }
   0xa   :  { %3393 = sst [smem:[#allocation28_spill]] %s3358_s9 }
   0xb   :  { %3394 = sst [smem:[#allocation29_spill]] %s3359_s10 }
   0xc   :  { %3395 = sst [smem:[#allocation30_spill]] %s3362_s13 }
   0xd   :  { %18 = sst [smem:[#allocation8]] %s3360_s11 }
   0xe   :  { %19 = sst [smem:[#allocation9]] %s3361_s12 }
   0xf   :  { %20 = vsyncpa [#allocation12], 0 }
  0x10   :  { %22 = vsyncpa [#allocation12 + $0x1], 0  ;;  %s2702_s29 = smov 0   ;;  %s2704_s30 = smov 0  }
  0x11   :  { %s2706_s14 = smov 0   ;;  %s2708_s15 = smov 0  }
  0x12   :  { %s2710_s16 = smov 0   ;;  %s2712_s17 = smov 0  }
  0x13   :  { %s2714_s18 = smov 0   ;;  %s2716_s11 = smov 0  }
  0x14   :  { %s2718_s19 = smov 0   ;;  %s2720_s12 = smov 0  }
  0x15   :  { %s2722_s20 = smov 0   ;;  %s2724_s21 = smov 0  }
  0x16 LB: > { %3396 = sst [smem:[#allocation14_spill]] %s2595_s12  ;;  %s40_s24 = sadd.s32 1, %s2591_s19  ;;  %s2603_s21 = sphi %s2724_s21, %s28_s21   ;;  %s2599_s20 = sphi %s2722_s20, %s3424_s20   ;;  %s2595_s12 = sphi %s2720_s12, %s3423_s12   ;;  %s2591_s19 = sphi %s2718_s19, %s3431_s19   ;;  %s2587_s11 = sphi %s2716_s11, %s3421_s11   ;;  %s2583_s18 = sphi %s2714_s18, %s3420_s18   ;;  %s2579_s17 = sphi %s2712_s17, %s3430_s17   ;;  %s2575_s16 = sphi %s2710_s16, %s3429_s16   ;;  %s2571_s15 = sphi %s2708_s15, %s3428_s15   ;;  %s2567_s14 = sphi %s2706_s14, %s3427_s14   ;;  %s2563_s30 = sphi %s2704_s30, %s3426_s30   ;;  %s2559_s29 = sphi %s2702_s29, %s3425_s29  }
  0x17   : > { %3397 = sst [smem:[#allocation15_spill]] %s2599_s20  ;;  %p41_p0 = scmp.ge.s32.totalorder %s40_s24, 2 }
  0x18   : > { %s43_s25 = sadd.s32 1, %s2595_s12  ;;  %p51_p1 = scmp.eq.s32.totalorder %s2595_s12, 0 }
  0x19   : > { %p52_p2 = scmp.eq.s32.totalorder %s2595_s12, 3  ;;  %s3433_s24 = smov (%p41_p0, %s40_s24), 0 }
  0x1a   : > { %3398 = sst [smem:[#allocation16_spill]] %s3433_s24  ;;  %s3435_s25 = smov (!%p41_p0, %s43_s25), %s2595_s12 }
  0x1b   : > { %s47_s26 = sadd.s32 1, %s2599_s20  ;;  %p53_p3 = por %p52_p2, %p51_p1 }
  0x1c   : > { %p45_p4 = scmp.ge.s32.totalorder %s3435_s25, 4  ;;  %p71_p5 = scmp.ne.s32.totalorder %s2575_s16, %s2571_s15 }
  0x1d   : > { %s2777_s27 = scalar_select %p53_p3, %s2591_s19, 0 }
  0x1e   : > { %s3437_s25 = smov (%p45_p4, %s3435_s25), 0  ;;  %s3439_s26 = smov (!%p45_p4, %s47_s26), %s2599_s20 }
  0x1f   : > { %3399 = sst [smem:[#allocation17_spill]] %s3437_s25  ;;  %p55_p6 = scmp.eq.s32.totalorder %s3437_s25, 0 }
  0x20   : > { %p56_p7 = scmp.eq.s32.totalorder %s3437_s25, 3  ;;  %p49_p8 = scmp.ge.s32.totalorder %s3439_s26, 2 }
  0x21   : > { %p72_p9 = scmp.eq.s32.totalorder %s2603_s21, 0  ;;  %s64_s28 = sadd.s32 1, %s2575_s16 }
  0x22   : > { %p57_p10 = por %p56_p7, %p55_p6  ;;  %s3441_s26 = smov (%p49_p8, %s3439_s26), 0 }
  0x23   : > { %3400 = sst [smem:[#allocation18_spill]] %s3441_s26  ;;  %s59_s22 = ssub.s32 %s2599_s20, %s3441_s26 }
  0x24   : > { %s58_s23 = scalar_select %p57_p10, %s3433_s24, 0 }
  0x25   : > { %p2796_p11 = por %p72_p9, %p71_p5  ;;  %p363_p12 = scmp.ne.s32.totalorder %s2567_s14, %s2563_s30 }
  0x26   : > { %s60_s9 = ssub.s32 %s2777_s27, %s58_s23  ;;  %s3402_s8 = sadd.s32 4294967295, %s2603_s21  }
  0x27   : > { %s61_s10 = sor.u32 %s60_s9, %s59_s22  ;;  %p364_p13 = scmp.eq.s32.totalorder %s3402_s8, 15 }
  0x28   : > { %p62_p0 = scmp.eq.s32.totalorder %s61_s10, 0  ;;  %p369_p1 = scmp.ne.s32.totalorder %s2563_s30, %s2559_s29 }
  0x29   : > { %s345_s7 = scalar_select %p52_p2, %s2591_s19, 0 }
  0x2a   : > { %s2811_s6 = scalar_select %p62_p0, %s2575_s16, %s64_s28  }
  0x2b   : > { %s347_s5 = scalar_select %p56_p7, %s3433_s24, 0 }
  0x2c   : > { %p2816_p3 = por %p364_p13, %p363_p12  ;;  %s3404_s4 = sadd.s32 4294967294, %s2603_s21  }
  0x2d   : > { %p370_p4 = scmp.eq.s32.totalorder %s3404_s4, 15  ;;  %s349_s23 = ssub.s32 %s345_s7, %s347_s5 }
  0x2e   : > { %s353_s3 = sadd.s32 1, %s2567_s14  ;;  %s350_s2 = sor.u32 %s349_s23, %s59_s22 }
  0x2f   : > { %p2823_p5 = por %p370_p4, %p369_p1  ;;  %p351_p6 = scmp.eq.s32.totalorder %s350_s2, 0 }
  0x30   : > { %p1976_p2 = scmp.ge.s32.totalorder %s2603_s21, 16 }
  0x31   : > { %s2828_s8 = scalar_select %p351_p6, %s2567_s14, %s353_s3  }
  0x32   : > { %419 = sbr.rel (%p1976_p2) target bundleno = 66 (0x42), region = 60 }
  0x37   : > { %422 = sbr.rel (!%p2796_p11) target bundleno = 66 (0x42), region = 64  ;;  %s424_s4 = sand.u32 (%p2796_p11), 1, %s2575_s16  }
  0x38   : > { %s1978_s5 = sshll.u32 (%p2796_p11), %s2599_s20, 2  ;;  %s1977_s7 = sshll.u32 (%p2796_p11), %s424_s4, 4 }
  0x39   : > { %s432_s10 = sadd.s32 (%p2796_p11), %s1978_s5, %s2777_s27  ;;  %s3406_s0 = sld [smem:[#allocation19_spill]] (%p2796_p11) }
  0x3a   : > { %s1979_s22 = sshll.u32 (%p2796_p11), %s432_s10, 3  ;;  %s426_s3 = scalar_lea.vmem (%p2796_p11), [#allocation10], %s1977_s7 }
  0x3f   : > { %s434_s2 = scalar_lea.vmem %s3406_s0, %s1979_s22 }
  0x40   : > { %v465_v0 = vld [vmem:[%s434_s2] sm:$0xff]  ;;  %v467_v1 = vld [vmem:[%s434_s2 + $0x10] sm:$0xff] }
  0x41   : > { %466 = vst [vmem:[%s426_s3] sm:$0xff] %v465_v0  ;;  %468 = vst [vmem:[%s426_s3 + $0x8] sm:$0xff] %v467_v1 }
  0x42 PF: > { %p1980_p7 = scmp.ge.s32.totalorder %s2603_s21, 1  ;;  %p481_p8 = scmp.lt.s32.totalorder %s2603_s21, 17 }
  0x44   : > { %p482_p9 = pnand %p1980_p7, %p481_p8 }
  0x45   : > { %s488_s13 = sand.u32 (!%p482_p9), 1, %s2571_s15   ;;  %s3374_s27 = sand.u32 (!%p482_p9), 1, %s2563_s30  }
  0x46   : > { %485 = sbr.rel (%p482_p9) target bundleno = 2248 (0x8c8), region = 106  ;;  %s1981_s4 = sshll.u32 (!%p482_p9), %s488_s13, 4 }
  0x47   : > { %s1982_s5 = sshll.u32 (!%p482_p9), %s3374_s27, 4  ;;  %p540_p10 = scmp.lt.s32.totalorder (!%p482_p9), %s2587_s11, 1 }
  0x48   : > { %s2847_s7 = sshll.u32 (!%p482_p9), %s2579_s17, 7  ;;  %s3407_s1 = sld [smem:[#allocation20_spill]] (!%p482_p9) }
  0x49   : > { %s3375_s10 = sadd.s32 (!%p482_p9), 128, %s2847_s7  ;;  %s2856_s0 = scalar_lea.vmem (!%p482_p9), [#allocation10], %s1981_s4 }
  0x4a   : > { %s2858_s25 = scalar_lea.vmem (!%p482_p9), [#allocation11], %s1982_s5  ;;  %p1986_p11 = scmp.ne.s32.totalorder (!%p482_p9), %s2583_s18, 0 }
  0x4b   : > { %s541_s22 = scalar_select %p540_p10, %s2587_s11, 1 }
  0x4c   : > { %553 = sbr.rel (%p1986_p11) target bundleno = 515 (0x203), region = 114  ;;  %p1987_p12 = scmp.ne.s32.totalorder (!%p1986_p11), %s2579_s17, 0 }
  0x4d   : > { %s2019_s28 = sshll.u32 %s541_s22, 5 }
  0x4e   : > { %s2854_s3 = scalar_lea.vmem %s3407_s1, %s2019_s28 }
  0x51   : > { %557 = sbr.rel (%p1987_p12) target bundleno = 99 (0x63), region = 118 }
  0x56   : > { %vm558_vm0 = vcmask 7168   ;;  %v2605_v2 = vmov 0.0   ;;  %v2606_v3 = vmov 0  }
  0x57   : > { %559 = vst.msk [vmem:[#allocation4] sm:$0xff] %vm558_vm0, %v2605_v2  ;;  %560 = vst.msk [vmem:[#allocation4 + $0x8] sm:$0xff] %vm558_vm0, %v2605_v2 }
  0x58   : > { %561 = vst.msk [vmem:[#allocation4 + $0x10] sm:$0xff] %vm558_vm0, %v2605_v2  ;;  %562 = vst.msk [vmem:[#allocation4 + $0x18] sm:$0xff] %vm558_vm0, %v2605_v2 }
  0x59   : > { %563 = vst.msk [vmem:[#allocation5] sm:$0xff] %vm558_vm0, %v2605_v2  ;;  %564 = vst.msk [vmem:[#allocation5 + $0x8] sm:$0xff] %vm558_vm0, %v2605_v2 }
  0x5a   : > { %565 = vst.msk [vmem:[#allocation5 + $0x10] sm:$0xff] %vm558_vm0, %v2605_v2  ;;  %566 = vst.msk [vmem:[#allocation5 + $0x18] sm:$0xff] %vm558_vm0, %v2605_v2 }
  0x5b   : > { %567 = vst.msk [vmem:[#allocation6] sm:$0xff] %vm558_vm0, %v2605_v2  ;;  %568 = vst.msk [vmem:[#allocation6 + $0x8] sm:$0xff] %vm558_vm0, %v2605_v2 }
  0x5c   : > { %569 = vst.msk [vmem:[#allocation6 + $0x10] sm:$0xff] %vm558_vm0, %v2605_v2  ;;  %570 = vst.msk [vmem:[#allocation6 + $0x18] sm:$0xff] %vm558_vm0, %v2605_v2 }
  0x5d   : > { %571 = vst.msk [vmem:[#allocation7] sm:$0xff] %vm558_vm0, %v2605_v2  ;;  %572 = vst.msk [vmem:[#allocation7 + $0x8] sm:$0xff] %vm558_vm0, %v2605_v2 }
  0x5e   : > { %573 = vst.msk [vmem:[#allocation7 + $0x10] sm:$0xff] %vm558_vm0, %v2605_v2  ;;  %574 = vst.msk [vmem:[#allocation7 + $0x18] sm:$0xff] %vm558_vm0, %v2605_v2 }
  0x5f   : > { %575 = vst [vmem:[#allocation2] sm:$0xf] %v2606_v3  ;;  %576 = vst [vmem:[#allocation2 + $0x10] sm:$0xf] %v2606_v3 }
  0x60   : > { %577 = vst [vmem:[#allocation2 + $0x20] sm:$0xf] %v2606_v3  ;;  %578 = vst [vmem:[#allocation2 + $0x30] sm:$0xf] %v2606_v3 }
  0x61   : > { %579 = vst [vmem:[#allocation2 + $0xc] sm:$0xf] %v2606_v3  ;;  %580 = vst [vmem:[#allocation2 + $0x1c] sm:$0xf] %v2606_v3 }
  0x62   : > { %581 = vst [vmem:[#allocation2 + $0x2c] sm:$0xf] %v2606_v3  ;;  %582 = vst [vmem:[#allocation2 + $0x3c] sm:$0xf] %v2606_v3 }
  0x63 PF: > { %v583_v4 = vld [vmem:[%s2856_s0] sm:$0xff]  ;;  %v584_v5 = vld [vmem:[%s2856_s0 + $0x8] sm:$0xff]  ;;  %vm624_vm1 = vcmask 130048   ;;  %s3408_s4 = sld [smem:[#allocation21_spill]]  ;;  %v2607_v8 = vmov 0   ;;  %v2608_v10 = vmov 1.0  }
  0x64   : > { %v589_v6 = vpack.c.bf16 %v584_v5, %v583_v4  ;;  %2419 = vset.pattern.permute.xlu0 %v2607_v8  ;;  %2420 = vset.pattern.permute.xlu1 %v2607_v8  ;;  %v590_v9 = vld [vmem:[%s2854_s3] sm:$0xff]  ;;  %v592_v12 = vld [vmem:[%s2854_s3 + $0x10] sm:$0xff]  ;;  %v591_v13 = vld [vmem:[%s2854_s3 + $0x8] sm:$0xff]  ;;  %s680_s28 = sld [smem:[#allocation8]]  ;;  %s710_s23 = sshra.s32 %s3375_s10, 7  ;;  %vm811_vm6 = vcmask 7168  }
  0x65   : > { %2124 = vmatprep.subr.mxu1 %v2608_v10  ;;  %596 = vperm.xlu0 %2419, %v590_v9   ;;  %v593_v14 = vld [vmem:[%s2854_s3 + $0x18] sm:$0xff]  ;;  %s1996_s2 = sshll.u32 %s710_s23, 2  ;;  %v719_v44 = vld [vmem:[#allocation4 + $0x8] sm:$0xff]  ;;  %v718_v46 = vld [vmem:[#allocation4] sm:$0xff] }
  0x66   : > { %2118 = vmatprep.subr.bf16.mxu0 %v589_v6  ;;  %606 = vperm.xlu1 %2420, %v592_v12   ;;  %s713_s3 = scalar_lea.vmem [#allocation2], %s1996_s2  ;;  %v817_v47 = vld [vmem:[#allocation5 + $0x8] sm:$0xff]  ;;  %v721_v51 = vld [vmem:[#allocation4 + $0x18] sm:$0xff]  ;;  %v816_v52 = vld [vmem:[#allocation5] sm:$0xff] }
  0x67   : > { %2119 = vmatpush3.bf16.msra.mxu0 %v589_v6  ;;  %2125 = vmatpush3.msra.mxu1 %v2608_v10  ;;  %v720_v57 = vld [vmem:[#allocation4 + $0x10] sm:$0xff]  ;;  %v819_v58 = vld [vmem:[#allocation5 + $0x18] sm:$0xff] }
  0x68   : > { %2126 = vmatprep.subr.mxu1 %v2608_v10  ;;  %2162 = vmatprep.subr.mxu0 %v2608_v10  ;;  %v818_v63 = vld [vmem:[#allocation5 + $0x10] sm:$0xff] }
  0x69   : > { %v2421_v7 = vld [vmem:[%s3408_s4] sm:$0xff]   ;;  %v2422_v11 = vld [vmem:[%s3408_s4 + $0x8] sm:$0xff]   ;;  %2127 = vmatpush3.msra.mxu1 %v2608_v10  ;;  %601 = vperm.xlu0 %2419, %v591_v13  }
  0x6a   : > { %2120 = vmatprep.mubr.msk.bf16.mxu0 %vm624_vm1, %v2421_v7  ;;  %611 = vperm.xlu1 %2420, %v593_v14   ;;  %v685_v18 = vstv %s680_s28 }
  0x6b   : > { %2121 = vmatmul.mubr.msk.bf16.vlgmr.msra.gmra.mxu0 %vm624_vm1, %v2422_v11  ;;  %2128 = vmatprep.subr.mxu1 %v2608_v10 }
  0x6c   : > { %2163 = vmatpush3.msra.mxu0 %v2608_v10  ;;  %2129 = vmatpush3.msra.mxu1 %v2608_v10 }
  0x6d   : > { %2164 = vmatprep.subr.mxu0 %v2608_v10  ;;  %2130 = vmatprep.subr.mxu1 %v2608_v10 }
  0x6e   : > { %2165 = vmatpush3.msra.mxu0 %v2608_v10  ;;  %2131 = vmatpush3.msra.mxu1 %v2608_v10 }
  0x6f   : > { %2166 = vmatprep.subr.mxu0 %v2608_v10  ;;  %2132 = vmatprep.subr.mxu1 %v2608_v10 }
  0x70   : > { %2167 = vmatpush3.msra.mxu0 %v2608_v10  ;;  %2133 = vmatpush3.msra.mxu1 %v2608_v10 }
  0x71   : > { %2168 = vmatprep.subr.mxu0 %v2608_v10  ;;  %2134 = vmatprep.subr.mxu1 %v2608_v10 }
  0x72   : > { %2169 = vmatpush3.msra.mxu0 %v2608_v10  ;;  %2135 = vmatpush3.msra.mxu1 %v2608_v10 }
  0x73   : > { %2170 = vmatprep.subr.mxu0 %v2608_v10  ;;  %2136 = vmatprep.subr.mxu1 %v2608_v10 }
  0x74   : > { %2171 = vmatpush3.msra.mxu0 %v2608_v10  ;;  %2137 = vmatpush3.msra.mxu1 %v2608_v10 }
  0x75   : > { %2172 = vmatprep.subr.mxu0 %v2608_v10  ;;  %2138 = vmatprep.subr.mxu1 %v2608_v10 }
  0x76   : > { %2173 = vmatpush3.msra.mxu0 %v2608_v10  ;;  %2139 = vmatpush3.msra.mxu1 %v2608_v10 }
  0x77   : > { %2174 = vmatprep.subr.mxu0 %v2608_v10  ;;  %2140 = vmatprep.subr.mxu1 %v2608_v10 }
  0x78   : > { %2175 = vmatpush3.msra.mxu0 %v2608_v10  ;;  %2141 = vmatpush3.msra.mxu1 %v2608_v10 }
  0x79   : > { %2176 = vmatprep.subr.mxu0 %v2608_v10  ;;  %2142 = vmatprep.subr.mxu1 %v2608_v10 }
  0x7a   : > { %2177 = vmatpush3.msra.mxu0 %v2608_v10  ;;  %2143 = vmatpush3.msra.mxu1 %v2608_v10 }
  0x7b   : > { %2178 = vmatprep.subr.mxu0 %v2608_v10  ;;  %2144 = vmatprep.subr.mxu1 %v2608_v10 }
  0x7c   : > { %2179 = vmatpush3.msra.mxu0 %v2608_v10  ;;  %2145 = vmatpush3.msra.mxu1 %v2608_v10 }
  0x7d   : > { %2180 = vmatprep.subr.mxu0 %v2608_v10  ;;  %2146 = vmatprep.subr.mxu1 %v2608_v10 }
  0x7e   : > { %2181 = vmatpush3.msra.mxu0 %v2608_v10  ;;  %2147 = vmatpush3.msra.mxu1 %v2608_v10 }
  0x7f   : > { %2182 = vmatprep.subr.mxu0 %v2608_v10  ;;  %2148 = vmatprep.subr.mxu1 %v2608_v10 }
  0x80   : > { %2183 = vmatpush3.msra.mxu0 %v2608_v10  ;;  %2149 = vmatpush3.msra.mxu1 %v2608_v10 }
  0x81   : > { %2184 = vmatprep.subr.mxu0 %v2608_v10  ;;  %2150 = vmatprep.subr.mxu1 %v2608_v10 }
  0x82   : > { %2185 = vmatpush3.msra.mxu0 %v2608_v10  ;;  %2151 = vmatpush3.msra.mxu1 %v2608_v10 }
  0x83   : > { %2186 = vmatprep.subr.mxu0 %v2608_v10  ;;  %2152 = vmatprep.subr.mxu1 %v2608_v10 }
  0x84   : > { %2187 = vmatpush3.msra.mxu0 %v2608_v10  ;;  %2153 = vmatpush3.msra.mxu1 %v2608_v10 }
  0x85   : > { %2188 = vmatprep.subr.mxu0 %v2608_v10  ;;  %2154 = vmatprep.subr.mxu1 %v2608_v10 }
  0x86   : > { %2189 = vmatpush3.msra.mxu0 %v2608_v10  ;;  %2155 = vmatpush3.msra.mxu1 %v2608_v10 }
  0x87   : > { %2190 = vmatprep.subr.mxu0 %v2608_v10 }
  0x88   : > { %2191 = vmatpush3.msra.mxu0 %v2608_v10 }
  0x89   : > { %2192 = vmatprep.subr.mxu0 %v2608_v10 }
  0x8a   : > { %2193 = vmatpush3.msra.mxu0 %v2608_v10 }
  0xe0   : > { %v597_v16 = vpop.permute.xlu0 %596 }
  0xe1   : > { %v607_v15 = vpop.permute.xlu1 %606 }
  0xe4   : > { %v602_v28 = vpop.permute.xlu0 %601 }
  0xe5   : > { %v612_v21 = vpop.permute.xlu1 %611 }
 0x12b   : > { %v2122_v17 = vpop.f32.mrf.mxu0 }
 0x12c   : > { %v674_v19 = vadd.f32 %v2122_v17, %v607_v15 }
 0x12d   : > { %v665_v20 = vpop.f32.mrf.mxu0 }
 0x12e   : > { %v688_v22 = vmul.f32 %v685_v18, %v674_v19  ;;  %v666_v23 = vadd.f32 %v665_v20, %v597_v16  ;;  %vm683_vm2 = vcmp.ge.f32.partialorder %v674_v19, 0.0 }
 0x12f   : > { %v2123_v24 = vpop.f32.mrf.mxu0 }
 0x130   : > { %v686_v25 = vmul.f32 %v685_v18, %v666_v23  ;;  %v677_v26 = vadd.f32 %v2123_v24, %v612_v21  ;;  %vm681_vm3 = vcmp.ge.f32.partialorder %v666_v23, 0.0  ;;  %v692_v27 = vsel %vm683_vm2, %v674_v19, %v688_v22 }
 0x131   : > { %v668_v29 = vpop.f32.mrf.mxu0  ;;  %v2022_v30 = vpack.c.bf16 %v692_v27, %v692_v27  ;;  %v822_v42 = vmul.f32 %v692_v27, %v692_v27 }
 0x132   : > { %v689_v31 = vmul.f32 %v685_v18, %v677_v26  ;;  %v669_v32 = vadd.f32 %v668_v29, %v602_v28  ;;  %v690_v33 = vsel %vm681_vm3, %v666_v23, %v686_v25  ;;  %vm684_vm4 = vcmp.ge.f32.partialorder %v677_v26, 0.0 }
 0x133   : > { %v2020_v34 = vpack.c.bf16 %v690_v33, %v690_v33  ;;  %2156 = vmatprep.mubr.f32.mxu1 %v690_v33  ;;  %v820_v35 = vmul.f32 %v690_v33, %v690_v33  ;;  %716 = vst [vmem:[%s713_s3 + $0x20] sm:$0xf] %v2022_v30 }
 0x134   : > { %v687_v36 = vmul.f32 %v685_v18, %v669_v32  ;;  %vm682_vm5 = vcmp.ge.f32.partialorder %v669_v32, 0.0  ;;  %v693_v37 = vsel %vm684_vm4, %v677_v26, %v689_v31 }
 0x135   : > { %714 = vst [vmem:[%s713_s3] sm:$0xf] %v2020_v34  ;;  %2194 = vmatprep.mubr.f32.mxu0 %v820_v35  ;;  %v2023_v38 = vpack.c.bf16 %v693_v37, %v693_v37  ;;  %v823_v43 = vmul.f32 %v693_v37, %v693_v37 }
 0x136   : > { %v691_v39 = vsel %vm682_vm5, %v669_v32, %v687_v36 }
 0x137   : > { %v2021_v40 = vpack.c.bf16 %v691_v39, %v691_v39  ;;  %2157 = vmatmul.mubr.f32.vlgmr.msra.gmra.mxu1 %v691_v39  ;;  %v821_v41 = vmul.f32 %v691_v39, %v691_v39  ;;  %717 = vst [vmem:[%s713_s3 + $0x30] sm:$0xf] %v2023_v38 }
 0x138   : > { %2159 = vmatprep.mubr.f32.mxu1 %v692_v27 }
 0x139   : > { %715 = vst [vmem:[%s713_s3 + $0x10] sm:$0xf] %v2021_v40  ;;  %2195 = vmatmul.mubr.f32.vlgmr.msra.gmra.mxu0 %v821_v41 }
 0x13a   : > { %2197 = vmatprep.mubr.f32.mxu0 %v822_v42 }
 0x13b   : > { %2160 = vmatmul.mubr.f32.gmra.mxu1 %v693_v37 }
 0x13d   : > { %2198 = vmatmul.mubr.f32.gmra.mxu0 %v823_v43 }
 0x1f7   : > { %v2158_v45 = vpop.f32.mrf.mxu1 }
 0x1f8   : > { %v808_v48 = vadd.f32 %v2158_v45, %v719_v44 }
 0x1f9   : > { %v788_v49 = vpop.f32.mrf.mxu1  ;;  %v2196_v50 = vpop.f32.mrf.mxu0 }
 0x1fa   : > { %813 = vst.msk [vmem:[#allocation4 + $0x8] sm:$0xff] %vm811_vm6, %v808_v48  ;;  %v807_v53 = vadd.f32 %v788_v49, %v718_v46  ;;  %v910_v54 = vadd.f32 %v2196_v50, %v817_v47 }
 0x1fb   : > { %v2161_v55 = vpop.f32.mrf.mxu1  ;;  %v890_v56 = vpop.f32.mrf.mxu0 }
 0x1fc   : > { %812 = vst.msk [vmem:[#allocation4] sm:$0xff] %vm811_vm6, %v807_v53  ;;  %914 = vst.msk [vmem:[#allocation5 + $0x8] sm:$0xff] %vm811_vm6, %v910_v54  ;;  %v810_v59 = vadd.f32 %v2161_v55, %v721_v51  ;;  %v909_v60 = vadd.f32 %v890_v56, %v816_v52 }
 0x1fd   : > { %v798_v61 = vpop.f32.mrf.mxu1  ;;  %v2199_v62 = vpop.f32.mrf.mxu0 }
 0x1fe   : > { %815 = vst.msk [vmem:[#allocation4 + $0x18] sm:$0xff] %vm811_vm6, %v810_v59  ;;  %913 = vst.msk [vmem:[#allocation5] sm:$0xff] %vm811_vm6, %v909_v60  ;;  %v809_v0 = vadd.f32 %v798_v61, %v720_v57  ;;  %v912_v1 = vadd.f32 %v2199_v62, %v819_v58 }
 0x1ff   : > { %v900_v2 = vpop.f32.mrf.mxu0 }
 0x200   : > { %814 = vst.msk [vmem:[#allocation4 + $0x10] sm:$0xff] %vm811_vm6, %v809_v0  ;;  %916 = vst.msk [vmem:[#allocation5 + $0x18] sm:$0xff] %vm811_vm6, %v912_v1  ;;  %v911_v3 = vadd.f32 %v900_v2, %v818_v63 }
 0x202   : > { %915 = vst.msk [vmem:[#allocation5 + $0x10] sm:$0xff] %vm811_vm6, %v911_v3 }
 0x203 PF: > { %p1997_p13 = scmp.ne.s32.totalorder %s2583_s18, 1 }
 0x204   : > { %s2610_s2 = smov (!%p1997_p13), 0.0   ;;  %s3409_s4 = sld [smem:[#allocation22_spill]] (!%p1997_p13) }
 0x205   : > { %920 = sbr.rel (%p1997_p13) target bundleno = 962 (0x3c2), region = 122  ;;  %s3410_s24 = sld [smem:[#allocation23_spill]] (!%p1997_p13) }
 0x20a   : > { %v921_v4 = vld [vmem:[#allocation4] sm:$0xff]  ;;  %v922_v5 = vld [vmem:[#allocation4 + $0x8] sm:$0xff]  ;;  %v923_v6 = vld [vmem:[#allocation4 + $0x10] sm:$0xff]  ;;  %vm925_vm7 = vcmask 7168   ;;  %v2609_v39 = vmov 0  }
 0x20b   : > { %v924_v7 = vld [vmem:[#allocation4 + $0x18] sm:$0xff]  ;;  %v926_v8 = vsel %vm925_vm7, %v921_v4, 0.0  ;;  %v927_v9 = vsel %vm925_vm7, %v922_v5, 0.0  ;;  %v929_v10 = vsel %vm925_vm7, %v923_v6, 0.0  ;;  %v945_v11 = vld [vmem:[#allocation5] sm:$0xff]  ;;  %v946_v12 = vld [vmem:[#allocation5 + $0x8] sm:$0xff]  ;;  %2424 = vset.pattern.permute.xlu0 %v2609_v39  ;;  %2423 = vset.pattern.permute.xlu1 %v2609_v39 }
 0x20c   : > { %v928_v13 = vadd.f32 %v927_v9, %v926_v8  ;;  %v947_v14 = vld [vmem:[#allocation5 + $0x10] sm:$0xff]  ;;  %v948_v15 = vld [vmem:[#allocation5 + $0x18] sm:$0xff]  ;;  %v949_v16 = vsel %vm925_vm7, %v945_v11, 0.0  ;;  %v950_v17 = vsel %vm925_vm7, %v946_v12, 0.0  ;;  %v931_v18 = vsel %vm925_vm7, %v924_v7, 0.0  ;;  %v975_v44 = vld [vmem:[%s3409_s4] sm:$0xff] }
 0x20d   : > { %v951_v19 = vadd.f32 %v950_v17, %v949_v16  ;;  %v952_v20 = vsel %vm925_vm7, %v947_v14, 0.0  ;;  %v954_v23 = vsel %vm925_vm7, %v948_v15, 0.0  ;;  %v977_v43 = vld [vmem:[%s3409_s4 + $0x10] sm:$0xff]  ;;  %v976_v48 = vld [vmem:[%s3409_s4 + $0x8] sm:$0xff]  ;;  %v978_v50 = vld [vmem:[%s3409_s4 + $0x18] sm:$0xff] }
 0x20e   : > { %v930_v21 = vadd.f32 %v929_v10, %v928_v13  ;;  %v984_v54 = vld [vmem:[%s3410_s24] sm:$0xff]  ;;  %v985_v57 = vld [vmem:[%s3410_s24 + $0x8] sm:$0xff]  ;;  %v986_v60 = vld [vmem:[%s3410_s24 + $0x10] sm:$0xff] }
 0x20f   : > { %v953_v22 = vadd.f32 %v952_v20, %v951_v19  ;;  %v987_v63 = vld [vmem:[%s3410_s24 + $0x18] sm:$0xff] }
 0x210   : > { %v932_v24 = vadd.f32 %v931_v18, %v930_v21 }
 0x211   : > { %v955_v25 = vadd.f32 %v954_v23, %v953_v22 }
 0x212   : > { %933 = vadd.xlane.f32.xlu0 %v932_v24 }
 0x216   : > { %956 = vadd.xlane.f32.xlu0 %v955_v25 }
 0x29b   : > { %v934_v26 = vpop.xlane.xlu0 %933 }
 0x29c   : > { %v935_v27 = vrot.slane %v934_v26, 4 }
 0x29e   : > { %v936_v28 = vadd.f32 %v935_v27, %v934_v26 }
 0x29f   : > { %v957_v29 = vpop.xlane.xlu0 %956 }
 0x2a0   : > { %v937_v30 = vrot.slane %v936_v28, 2  ;;  %v958_v31 = vrot.slane %v957_v29, 4 }
 0x2a2   : > { %v959_v32 = vadd.f32 %v958_v31, %v957_v29  ;;  %v938_v33 = vadd.f32 %v937_v30, %v936_v28 }
 0x2a4   : > { %v960_v34 = vrot.slane %v959_v32, 2  ;;  %v939_v35 = vrot.slane %v938_v33, 1 }
 0x2a6   : > { %v940_v36 = vadd.f32 %v939_v35, %v938_v33  ;;  %v961_v37 = vadd.f32 %v960_v34, %v959_v32 }
 0x2a8   : > { %2284 = vpush %v940_v36  ;;  %v962_v38 = vrot.slane %v961_v37, 1 }
 0x2aa   : > { %v963_v40 = vadd.f32 %v962_v38, %v961_v37 }
 0x2ac   : > { %2286 = vpush %v963_v40 }
 0x2d9   : > { %s2285_s15 = spop %2284 }
 0x2da   : > { %s944_s13 = smul.f32 0.00012207031, %s2285_s15 }
 0x2dc   : > { %s968_s5 = smul.f32 %s944_s13, %s944_s13 }
 0x2dd   : > { %s2287_s22 = spop %2286 }
 0x2de   : > { %s967_s28 = smul.f32 0.00012207031, %s2287_s22  ;;  %s3411_s22 = sadd.s32 128, %s2847_s7 }
 0x2e0   : > { %s969_s23 = ssub.f32 %s967_s28, %s968_s5 }
 0x2e2   : > { %s970_s3 = smax.f32 %s2610_s2, %s969_s23 }
 0x2e3   : > { %s971_s27 = sadd.f32 1e-05, %s970_s3 }
 0x2e5   : > { %v972_v41 = vstv %s971_s27 }
 0x2e6   : > { %2425 = vrsqrt.f32 %v972_v41 }
 0x2f3   : > { %v2426_v42 = vpop.eup %2425 }
 0x2f4   : > { %2288 = vpush %v2426_v42 }
 0x325   : > { %s2289_s15 = spop %2288 }
 0x326   : > { %v979_v45 = vstv %s2289_s15  ;;  %s988_s27 = smul.f32 %s2289_s15, %s944_s13 }
 0x327   : > { %v982_v46 = vmul.f32 %v979_v45, %v977_v43  ;;  %v980_v47 = vmul.f32 %v979_v45, %v975_v44  ;;  %v981_v49 = vmul.f32 %v979_v45, %v976_v48  ;;  %v983_v53 = vmul.f32 %v979_v45, %v978_v50 }
 0x328   : > { %v989_v51 = vstv %s988_s27  ;;  %s998_s27 = sshra.s32 %s3411_s22, 7 }
 0x329   : > { %1022 = vperm.xlu0 %2424, %v982_v46   ;;  %1012 = vperm.xlu1 %2423, %v980_v47   ;;  %v990_v52 = vmul.f32 %v989_v51, %v975_v44  ;;  %v991_v55 = vmul.f32 %v989_v51, %v976_v48  ;;  %v992_v58 = vmul.f32 %v989_v51, %v977_v43  ;;  %s1998_s28 = sshll.u32 %s998_s27, 2 }
 0x32a   : > { %v993_v61 = vmul.f32 %v989_v51, %v978_v50  ;;  %s1001_s23 = scalar_lea.vmem [#allocation2], %s1998_s28 }
 0x32b   : > { %v994_v56 = vsub.f32 %v984_v54, %v990_v52  ;;  %v995_v59 = vsub.f32 %v985_v57, %v991_v55  ;;  %v996_v62 = vsub.f32 %v986_v60, %v992_v58  ;;  %v1002_v2 = vld [vmem:[%s1001_s23] ss:$48 sps:$4 sm:$0xff]  }
 0x32c   : > { %v997_v0 = vsub.f32 %v987_v63, %v993_v61  ;;  %v1006_v4 = vunpack.c.l.bf16 %v1002_v2  ;;  %v1004_v6 = vld [vmem:[%s1001_s23 + $0x10] ss:$16 sps:$4 sm:$0xff]   ;;  %v1009_v18 = vunpack.c.h.bf16 %v1002_v2 }
 0x32d   : > { %1017 = vperm.xlu1 %2423, %v981_v49   ;;  %v1007_v8 = vunpack.c.l.bf16 %v1004_v6  ;;  %v1008_v11 = vunpack.c.h.bf16 %v1004_v6 }
 0x331   : > { %1027 = vperm.xlu1 %2423, %v983_v53  }
 0x335   : > { %1036 = vperm.xlu1 %2423, %v994_v56  }
 0x339   : > { %1041 = vperm.xlu1 %2423, %v995_v59  }
 0x33d   : > { %1046 = vperm.xlu1 %2423, %v996_v62  }
 0x341   : > { %1051 = vperm.xlu1 %2423, %v997_v0  }
 0x3a4   : > { %v1013_v1 = vpop.permute.xlu1 %1012  ;;  %v1023_v14 = vpop.permute.xlu0 %1022 }
 0x3a5   : > { %v1030_v7 = vmul.f32 %v1013_v1, %v1006_v4  ;;  %v1032_v17 = vmul.f32 %v1023_v14, %v1008_v11 }
 0x3a8   : > { %v1018_v3 = vpop.permute.xlu1 %1017 }
 0x3a9   : > { %v1031_v12 = vmul.f32 %v1018_v3, %v1007_v8 }
 0x3ac   : > { %v1028_v5 = vpop.permute.xlu1 %1027 }
 0x3ad   : > { %v1033_v22 = vmul.f32 %v1028_v5, %v1009_v18 }
 0x3b0   : > { %v1037_v9 = vpop.permute.xlu1 %1036 }
 0x3b1   : > { %v1054_v10 = vadd.f32 %v1037_v9, %v1030_v7 }
 0x3b3   : > { %v2024_v13 = vpack.c.bf16 %v1054_v10, %v1054_v10 }
 0x3b4   : > { %v1042_v15 = vpop.permute.xlu1 %1041 }
 0x3b5   : > { %1074 = vst [vmem:[%s1001_s23] sm:$0xf] %v2024_v13  ;;  %v1055_v16 = vadd.f32 %v1042_v15, %v1031_v12 }
 0x3b7   : > { %v2025_v19 = vpack.c.bf16 %v1055_v16, %v1055_v16 }
 0x3b8   : > { %v1047_v20 = vpop.permute.xlu1 %1046 }
 0x3b9   : > { %1075 = vst [vmem:[%s1001_s23 + $0x10] sm:$0xf] %v2025_v19  ;;  %v1056_v21 = vadd.f32 %v1047_v20, %v1032_v17 }
 0x3bb   : > { %v2026_v23 = vpack.c.bf16 %v1056_v21, %v1056_v21 }
 0x3bc   : > { %v1052_v24 = vpop.permute.xlu1 %1051 }
 0x3bd   : > { %1076 = vst [vmem:[%s1001_s23 + $0x20] sm:$0xf] %v2026_v23  ;;  %v1057_v25 = vadd.f32 %v1052_v24, %v1033_v22 }
 0x3bf   : > { %v2027_v26 = vpack.c.bf16 %v1057_v25, %v1057_v25 }
 0x3c1   : > { %1077 = vst [vmem:[%s1001_s23 + $0x30] sm:$0xf] %v2027_v26 }
 0x3c2 PF: > { %p2003_p0 = scmp.ne.s32.totalorder %s2583_s18, 2 }
 0x3c3   : > { %s3412_s10 = sld [smem:[#allocation24_spill]] (!%p2003_p0)  ;;  %s1082_s5 = sshra.s32 (!%p2003_p0), %s2847_s7, 7 }
 0x3c4   : > { %1081 = sbr.rel (%p2003_p0) target bundleno = 1568 (0x620), region = 126  ;;  %s3413_s23 = sld [smem:[#allocation25_spill]] (!%p2003_p0) }
 0x3c5   : > { %s3027_s22 = sshll.u32 (!%p2003_p0), %s1082_s5, 2  ;;  %s2614_s28 = smov (!%p2003_p0), 126  }
 0x3c6   : > { %s3030_s27 = scalar_lea.vmem (!%p2003_p0), [#allocation2], %s3027_s22  ;;  %s2615_s1 = smov (!%p2003_p0), 124  }
 0x3c7   : > { %s1291_s20 = sld [smem:[#allocation9]] (!%p2003_p0)  ;;  %s2617_s13 = smov (!%p2003_p0), 2  }
 0x3c8   : > { %s1359_s2 = scalar_lea.vmem (!%p2003_p0), [#allocation3], %s3027_s22 }
 0x3c9   : > { %v1106_v27 = vld [vmem:[%s3412_s10] sm:$0xff]  ;;  %v2611_v28 = vmov 1   ;;  %v2612_v29 = vmov 2   ;;  %v1107_v30 = vld [vmem:[%s3412_s10 + $0x8] sm:$0xff]  ;;  %v1108_v31 = vld [vmem:[%s3412_s10 + $0x10] sm:$0xff]  ;;  %v2613_v33 = vmov 0  }
 0x3ca   : > { %2427 = vset.pattern.permute.xlu0 %v2611_v28  ;;  %2428 = vset.pattern.permute.xlu1 %v2612_v29  ;;  %v1109_v32 = vld [vmem:[%s3412_s10 + $0x18] sm:$0xff]  ;;  %v1259_v34 = vld [vmem:[%s3413_s23] sm:$0xff]  ;;  %v1260_v35 = vld [vmem:[%s3413_s23 + $0x8] sm:$0xff]  ;;  %v2616_v8 = vmov 1.0   ;;  %vm1238_vm8 = vcmask 1014784   ;;  %vm1349_vm1 = vcmask 15360  }
 0x3cb   : > { %1147 = vperm.xlu0 %2427, %v1106_v27   ;;  %1191 = vperm.xlu1 %2428, %v1106_v27   ;;  %v1261_v36 = vld [vmem:[%s3413_s23 + $0x10] sm:$0xff]  ;;  %v1262_v37 = vld [vmem:[%s3413_s23 + $0x18] sm:$0xff]  ;;  %v3033_v38 = vld [vmem:[%s3030_s27] sm:$0xff]  ;;  %vm1490_vm2 = vcmask 7168  }
 0x3cc   : > { %v3036_v39 = vunpack.c.h.bf16 %v3033_v38  ;;  %v3039_v40 = vld [vmem:[%s3030_s27 + $0x10] sm:$0xff]  ;;  %v1087_v43 = vld [vmem:[%s3030_s27 + $0x8] ss:$16 sps:$4 sm:$0xff]   ;;  %v3054_v55 = vld [vmem:[%s3030_s27 + $0x20] sm:$0xff]  ;;  %2200 = vmatprep.subr.mxu0 %v2616_v8  ;;  %2238 = vmatprep.subr.mxu1 %v2616_v8  ;;  %v1094_v15 = vunpack.c.l.bf16 %v3033_v38 }
 0x3cd   : > { %v3045_v46 = vunpack.c.h.bf16 %v3039_v40  ;;  %v1096_v47 = vunpack.c.l.bf16 %v1087_v43  ;;  %v1099_v53 = vunpack.c.h.bf16 %v1087_v43  ;;  %v3058_v57 = vld [vmem:[%s3030_s27 + $0x30] sm:$0xff]  ;;  %v3061_v58 = vunpack.c.h.bf16 %v3054_v55  ;;  %v1091_v0 = vld [vmem:[%s3030_s27 + $0x28] ss:$16 sps:$4 sm:$0xff]   ;;  %2201 = vmatpush3.msra.mxu0 %v2616_v8  ;;  %2239 = vmatpush3.msra.mxu1 %v2616_v8 }
 0x3ce   : > { %v3064_v61 = vunpack.c.h.bf16 %v3058_v57  ;;  %v1102_v4 = vunpack.c.l.bf16 %v1091_v0  ;;  %v1105_v6 = vunpack.c.h.bf16 %v1091_v0  ;;  %2202 = vmatprep.subr.mxu0 %v2616_v8  ;;  %2240 = vmatprep.subr.mxu1 %v2616_v8  ;;  %v1097_v19 = vunpack.c.l.bf16 %v3039_v40 }
 0x3cf   : > { %1151 = vperm.xlu0 %2427, %v1107_v30   ;;  %1195 = vperm.xlu1 %2428, %v1107_v30   ;;  %v1100_v38 = vunpack.c.l.bf16 %v3054_v55 }
 0x3d0   : > { %2203 = vmatpush3.msra.mxu0 %v2616_v8  ;;  %2241 = vmatpush3.msra.mxu1 %v2616_v8 }
 0x3d1   : > { %2204 = vmatprep.subr.mxu0 %v2616_v8  ;;  %2242 = vmatprep.subr.mxu1 %v2616_v8 }
 0x3d2   : > { %2205 = vmatpush3.msra.mxu0 %v2616_v8  ;;  %2243 = vmatpush3.msra.mxu1 %v2616_v8 }
 0x3d3   : > { %1155 = vperm.xlu0 %2427, %v1108_v31   ;;  %2429 = vset.pattern.permute.xlu1 %v2611_v28 }
 0x3d4   : > { %1159 = vperm.xlu1 %2429, %v1109_v32   ;;  %2206 = vmatprep.subr.mxu0 %v2616_v8 }
 0x3d5   : > { %2244 = vmatprep.subr.mxu1 %v2616_v8  ;;  %2207 = vmatpush3.msra.mxu0 %v2616_v8 }
 0x3d6   : > { %2245 = vmatpush3.msra.mxu1 %v2616_v8  ;;  %2208 = vmatprep.subr.mxu0 %v2616_v8 }
 0x3d7   : > { %2430 = vset.pattern.permute.xlu0 %v2612_v29  ;;  %2246 = vmatprep.subr.mxu1 %v2616_v8 }
 0x3d8   : > { %1199 = vperm.xlu0 %2430, %v1108_v31   ;;  %2431 = vset.pattern.permute.xlu1 %v2612_v29 }
 0x3d9   : > { %1203 = vperm.xlu1 %2431, %v1109_v32   ;;  %2209 = vmatpush3.msra.mxu0 %v2616_v8 }
 0x3da   : > { %2247 = vmatpush3.msra.mxu1 %v2616_v8  ;;  %2210 = vmatprep.subr.mxu0 %v2616_v8 }
 0x3db   : > { %2248 = vmatprep.subr.mxu1 %v2616_v8  ;;  %2211 = vmatpush3.msra.mxu0 %v2616_v8 }
 0x3dc   : > { %2433 = vset.pattern.permute.xlu0 %v2613_v33  ;;  %2249 = vmatpush3.msra.mxu1 %v2616_v8 }
 0x3dd   : > { %2432 = vset.pattern.permute.xlu1 %v2613_v33  ;;  %1117 = vperm.xlu0 %2433, %v1107_v30   ;;  %v3153_v30 = vstv %s1291_s20 }
 0x3de   : > { %1112 = vperm.xlu1 %2432, %v1106_v27   ;;  %2212 = vmatprep.subr.mxu0 %v2616_v8 }
 0x3df   : > { %2250 = vmatprep.subr.mxu1 %v2616_v8  ;;  %2213 = vmatpush3.msra.mxu0 %v2616_v8 }
 0x3e0   : > { %2251 = vmatpush3.msra.mxu1 %v2616_v8  ;;  %2214 = vmatprep.subr.mxu0 %v2616_v8 }
 0x3e1   : > { %1265 = vperm.xlu0 %2433, %v1259_v34   ;;  %2252 = vmatprep.subr.mxu1 %v2616_v8 }
 0x3e2   : > { %1122 = vperm.xlu1 %2432, %v1108_v31   ;;  %2215 = vmatpush3.msra.mxu0 %v2616_v8 }
 0x3e3   : > { %2253 = vmatpush3.msra.mxu1 %v2616_v8  ;;  %2216 = vmatprep.subr.mxu0 %v2616_v8 }
 0x3e4   : > { %2254 = vmatprep.subr.mxu1 %v2616_v8  ;;  %2217 = vmatpush3.msra.mxu0 %v2616_v8 }
 0x3e5   : > { %1270 = vperm.xlu0 %2433, %v1260_v35   ;;  %2255 = vmatpush3.msra.mxu1 %v2616_v8 }
 0x3e6   : > { %1127 = vperm.xlu1 %2432, %v1109_v32   ;;  %2218 = vmatprep.subr.mxu0 %v2616_v8 }
 0x3e7   : > { %2256 = vmatprep.subr.mxu1 %v2616_v8  ;;  %2219 = vmatpush3.msra.mxu0 %v2616_v8 }
 0x3e8   : > { %2257 = vmatpush3.msra.mxu1 %v2616_v8  ;;  %2220 = vmatprep.subr.mxu0 %v2616_v8 }
 0x3e9   : > { %1275 = vperm.xlu0 %2433, %v1261_v36   ;;  %2258 = vmatprep.subr.mxu1 %v2616_v8 }
 0x3ea   : > { %2221 = vmatpush3.msra.mxu0 %v2616_v8  ;;  %2259 = vmatpush3.msra.mxu1 %v2616_v8 }
 0x3eb   : > { %2222 = vmatprep.subr.mxu0 %v2616_v8  ;;  %2260 = vmatprep.subr.mxu1 %v2616_v8 }
 0x3ec   : > { %2223 = vmatpush3.msra.mxu0 %v2616_v8  ;;  %2261 = vmatpush3.msra.mxu1 %v2616_v8 }
 0x3ed   : > { %1280 = vperm.xlu0 %2433, %v1262_v37   ;;  %2224 = vmatprep.subr.mxu0 %v2616_v8 }
 0x3ee   : > { %2262 = vmatprep.subr.mxu1 %v2616_v8  ;;  %2225 = vmatpush3.msra.mxu0 %v2616_v8 }
 0x3ef   : > { %2263 = vmatpush3.msra.mxu1 %v2616_v8  ;;  %2226 = vmatprep.subr.mxu0 %v2616_v8 }
 0x3f0   : > { %2264 = vmatprep.subr.mxu1 %v2616_v8  ;;  %2227 = vmatpush3.msra.mxu0 %v2616_v8 }
 0x3f1   : > { %2265 = vmatpush3.msra.mxu1 %v2616_v8  ;;  %2228 = vmatprep.subr.mxu0 %v2616_v8 }
 0x3f2   : > { %2266 = vmatprep.subr.mxu1 %v2616_v8  ;;  %2229 = vmatpush3.msra.mxu0 %v2616_v8 }
 0x3f3   : > { %2267 = vmatpush3.msra.mxu1 %v2616_v8  ;;  %2230 = vmatprep.subr.mxu0 %v2616_v8 }
 0x3f4   : > { %2268 = vmatprep.subr.mxu1 %v2616_v8  ;;  %2231 = vmatpush3.msra.mxu0 %v2616_v8 }
 0x3f5   : > { %2269 = vmatpush3.msra.mxu1 %v2616_v8 }
 0x446   : > { %v1148_v41 = vpop.permute.xlu0 %1147  ;;  %v1192_v42 = vpop.permute.xlu1 %1191 }
 0x447   : > { %v1162_v44 = vmul.f32 %v1148_v41, %v3036_v39  ;;  %v1206_v45 = vmul.f32 %v1192_v42, %v3036_v39  ;;  %v1207_v52 = vmul.f32 %v1192_v42, %v1096_v47 }
 0x449   : > { %1170 = vrot.lane.b32.xlu1 %v1162_v44, %s2614_s28  ;;  %1222 = vrot.lane.b32.xlu0 %v1206_v45, %s2615_s1 }
 0x44a   : > { %v1152_v48 = vpop.permute.xlu0 %1151  ;;  %v1196_v49 = vpop.permute.xlu1 %1195 }
 0x44b   : > { %v1163_v50 = vmul.f32 %v1152_v48, %v3045_v46  ;;  %v1208_v51 = vmul.f32 %v1196_v49, %v3045_v46  ;;  %v1209_v59 = vmul.f32 %v1196_v49, %v1099_v53  ;;  %v1103_v49 = vunpack.c.l.bf16 %v3058_v57 }
 0x44d   : > { %1172 = vrot.lane.b32.xlu1 %v1163_v50, %s2614_s28  ;;  %1226 = vrot.lane.b32.xlu0 %v1208_v51, %s2615_s1 }
 0x44e   : > { %v1156_v54 = vpop.permute.xlu0 %1155 }
 0x44f   : > { %v1160_v56 = vpop.permute.xlu1 %1159  ;;  %v1164_v2 = vmul.f32 %v1156_v54, %v3061_v58 }
 0x450   : > { %v1165_v3 = vmul.f32 %v1160_v56, %v3064_v61 }
 0x451   : > { %1224 = vrot.lane.b32.xlu1 %v1207_v52, %s2615_s1 }
 0x453   : > { %v1200_v60 = vpop.permute.xlu0 %1199 }
 0x454   : > { %v1210_v62 = vmul.f32 %v1200_v60, %v3061_v58  ;;  %v1204_v63 = vpop.permute.xlu1 %1203  ;;  %v1211_v5 = vmul.f32 %v1200_v60, %v1102_v4 }
 0x455   : > { %1228 = vrot.lane.b32.xlu1 %v1209_v59, %s2615_s1  ;;  %v1212_v1 = vmul.f32 %v1204_v63, %v3064_v61  ;;  %v1213_v7 = vmul.f32 %v1204_v63, %v1105_v6 }
 0x456   : > { %1230 = vrot.lane.b32.xlu0 %v1210_v62, %s2615_s1 }
 0x458   : > { %v1118_v9 = vpop.permute.xlu0 %1117 }
 0x459   : > { %1174 = vrot.lane.b32.xlu1 %v1164_v2, %s2614_s28  ;;  %v1113_v11 = vpop.permute.xlu1 %1112  ;;  %v1132_v23 = vmul.f32 %v1118_v9, %v1097_v19  ;;  %v1133_v35 = vmul.f32 %v1118_v9, %v3045_v46 }
 0x45a   : > { %1234 = vrot.lane.b32.xlu0 %v1212_v1, %s2615_s1  ;;  %v1130_v18 = vmul.f32 %v1113_v11, %v1094_v15  ;;  %v1131_v28 = vmul.f32 %v1113_v11, %v3036_v39 }
 0x45c   : > { %v1266_v10 = vpop.permute.xlu0 %1265 }
 0x45d   : > { %1176 = vrot.lane.b32.xlu1 %v1165_v3, %s2614_s28  ;;  %v3142_v13 = vpop.permute.xlu1 %1122 }
 0x45e   : > { %v1134_v46 = vmul.f32 %v3142_v13, %v1100_v38  ;;  %v1135_v8 = vmul.f32 %v3142_v13, %v3061_v58 }
 0x460   : > { %v1271_v12 = vpop.permute.xlu0 %1270 }
 0x461   : > { %1232 = vrot.lane.b32.xlu1 %v1211_v5, %s2615_s1  ;;  %v3147_v16 = vpop.permute.xlu1 %1127 }
 0x462   : > { %v1136_v62 = vmul.f32 %v3147_v16, %v1103_v49 }
 0x464   : > { %v3144_v14 = vpop.permute.xlu0 %1275 }
 0x465   : > { %1236 = vrot.lane.b32.xlu1 %v1213_v7, %s2615_s1 }
 0x468   : > { %v3149_v17 = vpop.permute.xlu0 %1280 }
 0x4bb   : > { %v1171_v20 = vpop.permute.xlu1 %1170  ;;  %v1223_v21 = vpop.permute.xlu0 %1222 }
 0x4bc   : > { %v1182_v22 = vadd.f32 %v1171_v20, %v1130_v18  ;;  %v1183_v32 = vadd.f32 %v1171_v20, %v1131_v28 }
 0x4be   : > { %v1251_v24 = vadd.f32 %v1223_v21, %v1182_v22  ;;  %v1137_v22 = vmul.f32 %v3147_v16, %v3064_v61 }
 0x4bf   : > { %v1173_v25 = vpop.permute.xlu1 %1172  ;;  %v1227_v26 = vpop.permute.xlu0 %1226 }
 0x4c0   : > { %v1184_v27 = vadd.f32 %v1173_v25, %v1132_v23  ;;  %v1283_v29 = vadd.f32 %v1266_v10, %v1251_v24  ;;  %v1185_v41 = vadd.f32 %v1173_v25, %v1133_v35 }
 0x4c2   : > { %v1253_v31 = vadd.f32 %v1227_v26, %v1184_v27  ;;  %v1301_v36 = vmul.f32 %v3153_v30, %v1283_v29  ;;  %vm1292_vm9 = vcmp.ge.f32.partialorder %v1283_v29, 0.0 }
 0x4c3   : > { %v1225_v33 = vpop.permute.xlu1 %1224 }
 0x4c4   : > { %v1239_v34 = vsel %vm1238_vm8, %v1223_v21, %v1225_v33  ;;  %v1285_v40 = vadd.f32 %v1271_v12, %v1253_v31  ;;  %v3161_v48 = vsel %vm1292_vm9, %v1283_v29, %v1301_v36 }
 0x4c5   : > { %v1252_v37 = vadd.f32 %v1239_v34, %v1183_v32  ;;  %v1499_v56 = vmul.f32 %v3161_v48, %v3161_v48 }
 0x4c6   : > { %v1303_v50 = vmul.f32 %v3153_v30, %v1285_v40  ;;  %vm1294_vm11 = vcmp.ge.f32.partialorder %v1285_v40, 0.0 }
 0x4c7   : > { %v1284_v39 = vadd.f32 %v1266_v10, %v1252_v37  ;;  %v1229_v42 = vpop.permute.xlu1 %1228 }
 0x4c8   : > { %v1240_v43 = vsel %vm1238_vm8, %v1227_v26, %v1229_v42  ;;  %v1231_v47 = vpop.permute.xlu0 %1230  ;;  %v1311_v1 = vsel %vm1294_vm11, %v1285_v40, %v1303_v50 }
 0x4c9   : > { %v1302_v44 = vmul.f32 %v3153_v30, %v1284_v39  ;;  %v1254_v45 = vadd.f32 %v1240_v43, %v1185_v41  ;;  %vm1293_vm10 = vcmp.ge.f32.partialorder %v1284_v39, 0.0  ;;  %v1501_v9 = vmul.f32 %v1311_v1, %v1311_v1 }
 0x4cb   : > { %v1286_v51 = vadd.f32 %v1271_v12, %v1254_v45  ;;  %v1175_v52 = vpop.permute.xlu1 %1174  ;;  %v3166_v53 = vsel %vm1293_vm10, %v1284_v39, %v1302_v44 }
 0x4cc   : > { %v1186_v54 = vadd.f32 %v1175_v52, %v1134_v46  ;;  %v2434_v55 = vpack.i.bf16 %v3166_v53, %v3161_v48  ;;  %v1500_v59 = vmul.f32 %v3166_v53, %v3166_v53  ;;  %v2028_v57 = vpack.c.bf16 %v3166_v53, %v3161_v48  ;;  %v1235_v3 = vpop.permute.xlu0 %1234 }
 0x4cd   : > { %v1304_v60 = vmul.f32 %v3153_v30, %v1286_v51  ;;  %vm1295_vm12 = vcmp.ge.f32.partialorder %v1286_v51, 0.0  ;;  %v1187_v15 = vadd.f32 %v1175_v52, %v1135_v8 }
 0x4ce   : > { %v1255_v63 = vadd.f32 %v1231_v47, %v1186_v54  ;;  %2435 = vrot.lane.b32.xlu0 %v2434_v55, %s2617_s13  ;;  %v2454_v0 = vpack.i.bf16 %v1500_v59, %v1499_v56 }
 0x4cf   : > { %v1177_v2 = vpop.permute.xlu1 %1176  ;;  %v1312_v4 = vsel %vm1295_vm12, %v1286_v51, %v1304_v60 }
 0x4d0   : > { %v1287_v5 = vadd.f32 %v3144_v14, %v1255_v63  ;;  %v1188_v6 = vadd.f32 %v1177_v2, %v1136_v62  ;;  %2455 = vrot.lane.b32.xlu1 %v2454_v0, %s2617_s13  ;;  %v2439_v7 = vpack.i.bf16 %v1312_v4, %v1311_v1  ;;  %v1502_v10 = vmul.f32 %v1312_v4, %v1312_v4 }
 0x4d1   : > { %v2029_v11 = vpack.c.bf16 %v1312_v4, %v1311_v1  ;;  %v1189_v13 = vadd.f32 %v1177_v2, %v1137_v22 }
 0x4d2   : > { %v1257_v12 = vadd.f32 %v1235_v3, %v1188_v6  ;;  %2440 = vrot.lane.b32.xlu0 %v2439_v7, %s2617_s13  ;;  %v2459_v19 = vpack.i.bf16 %v1502_v10, %v1501_v9  ;;  %v1305_v20 = vmul.f32 %v3153_v30, %v1287_v5  ;;  %vm1296_vm13 = vcmp.ge.f32.partialorder %v1287_v5, 0.0 }
 0x4d3   : > { %v1233_v18 = vpop.permute.xlu1 %1232 }
 0x4d4   : > { %v1241_v21 = vsel %vm1238_vm8, %v1231_v47, %v1233_v18  ;;  %v1289_v23 = vadd.f32 %v3149_v17, %v1257_v12  ;;  %2460 = vrot.lane.b32.xlu1 %v2459_v19, %s2617_s13  ;;  %v1313_v27 = vsel %vm1296_vm13, %v1287_v5, %v1305_v20 }
 0x4d5   : > { %v1256_v58 = vadd.f32 %v1241_v21, %v1187_v15  ;;  %v1503_v33 = vmul.f32 %v1313_v27, %v1313_v27 }
 0x4d6   : > { %v1307_v28 = vmul.f32 %v3153_v30, %v1289_v23  ;;  %vm1298_vm15 = vcmp.ge.f32.partialorder %v1289_v23, 0.0 }
 0x4d7   : > { %v1288_v24 = vadd.f32 %v3144_v14, %v1256_v58  ;;  %v1237_v25 = vpop.permute.xlu1 %1236 }
 0x4d8   : > { %v1242_v26 = vsel %vm1238_vm8, %v1235_v3, %v1237_v25  ;;  %v1315_v36 = vsel %vm1298_vm15, %v1289_v23, %v1307_v28  ;;  %v1364_v28 = vld [vmem:[#allocation6] sm:$0xff] }
 0x4d9   : > { %v1306_v29 = vmul.f32 %v3153_v30, %v1288_v24  ;;  %v1258_v31 = vadd.f32 %v1242_v26, %v1189_v13  ;;  %vm1297_vm14 = vcmp.ge.f32.partialorder %v1288_v24, 0.0  ;;  %v1505_v41 = vmul.f32 %v1315_v36, %v1315_v36  ;;  %v1365_v26 = vld [vmem:[#allocation6 + $0x8] sm:$0xff] }
 0x4db   : > { %v1290_v61 = vadd.f32 %v3149_v17, %v1258_v31  ;;  %v1314_v16 = vsel %vm1297_vm14, %v1288_v24, %v1306_v29  ;;  %v1496_v31 = vld [vmem:[#allocation7 + $0x8] sm:$0xff] }
 0x4dc   : > { %v2444_v32 = vpack.i.bf16 %v1314_v16, %v1313_v27  ;;  %v1504_v34 = vmul.f32 %v1314_v16, %v1314_v16  ;;  %v2030_v35 = vpack.c.bf16 %v1314_v16, %v1313_v27 }
 0x4dd   : > { %v1308_v14 = vmul.f32 %v3153_v30, %v1290_v61  ;;  %vm1299_vm0 = vcmp.ge.f32.partialorder %v1290_v61, 0.0 }
 0x4de   : > { %2445 = vrot.lane.b32.xlu0 %v2444_v32, %s2617_s13  ;;  %v2464_v37 = vpack.i.bf16 %v1504_v34, %v1503_v33  ;;  %v1495_v33 = vld [vmem:[#allocation7] sm:$0xff] }
 0x4df   : > { %v1316_v38 = vsel %vm1299_vm0, %v1290_v61, %v1308_v14 }
 0x4e0   : > { %2465 = vrot.lane.b32.xlu1 %v2464_v37, %s2617_s13  ;;  %v2449_v40 = vpack.i.bf16 %v1316_v38, %v1315_v36  ;;  %v1506_v39 = vmul.f32 %v1316_v38, %v1316_v38  ;;  %v2031_v42 = vpack.c.bf16 %v1316_v38, %v1315_v36  ;;  %v1367_v36 = vld [vmem:[#allocation6 + $0x18] sm:$0xff]  ;;  %v1366_v38 = vld [vmem:[#allocation6 + $0x10] sm:$0xff] }
 0x4e2   : > { %2450 = vrot.lane.b32.xlu0 %v2449_v40, %s2617_s13  ;;  %v2469_v17 = vpack.i.bf16 %v1506_v39, %v1505_v41  ;;  %v1498_v40 = vld [vmem:[#allocation7 + $0x18] sm:$0xff] }
 0x4e4   : > { %2470 = vrot.lane.b32.xlu1 %v2469_v17, %s2617_s13  ;;  %v1497_v17 = vld [vmem:[#allocation7 + $0x10] sm:$0xff] }
 0x4e6   : > { %1337 = vrot.lane.b32.xlu0 %v2028_v57, %s2617_s13 }
 0x4e8   : > { %1339 = vrot.lane.b32.xlu1 %v2029_v11, %s2617_s13 }
 0x4ea   : > { %1341 = vrot.lane.b32.xlu0 %v2030_v35, %s2617_s13 }
 0x4ec   : > { %1343 = vrot.lane.b32.xlu1 %v2031_v42, %s2617_s13 }
 0x540   : > { %v2436_v30 = vpop.permute.xlu0 %2435 }
 0x541   : > { %v2438_v43 = vunpack.i.h.bf16 %v2436_v30  ;;  %v2437_v44 = vunpack.i.l.bf16 %v2436_v30 }
 0x542   : > { %v2456_v45 = vpop.permute.xlu1 %2455 }
 0x543   : > { %v2458_v47 = vunpack.i.h.bf16 %v2456_v45  ;;  %v2457_v48 = vunpack.i.l.bf16 %v2456_v45  ;;  %v1393_v46 = vsel %vm1349_vm1, %v2437_v44, %v2438_v43 }
 0x544   : > { %v2441_v49 = vpop.permute.xlu0 %2440  ;;  %2232 = vmatprep.mubr.f32.mxu0 %v1393_v46 }
 0x545   : > { %v2443_v50 = vunpack.i.h.bf16 %v2441_v49  ;;  %v2442_v51 = vunpack.i.l.bf16 %v2441_v49  ;;  %v1531_v52 = vsel %vm1349_vm1, %v2457_v48, %v2458_v47 }
 0x546   : > { %2270 = vmatprep.mubr.f32.mxu1 %v1531_v52  ;;  %v2461_v53 = vpop.permute.xlu1 %2460 }
 0x547   : > { %v1394_v54 = vsel %vm1349_vm1, %v2442_v51, %v2443_v50  ;;  %v2463_v55 = vunpack.i.h.bf16 %v2461_v53  ;;  %v2462_v56 = vunpack.i.l.bf16 %v2461_v53 }
 0x548   : > { %2233 = vmatmul.mubr.f32.vlgmr.msra.gmra.mxu0 %v1394_v54 }
 0x549   : > { %v1532_v59 = vsel %vm1349_vm1, %v2462_v56, %v2463_v55 }
 0x54a   : > { %2271 = vmatmul.mubr.f32.vlgmr.msra.gmra.mxu1 %v1532_v59 }
 0x550   : > { %v2446_v60 = vpop.permute.xlu0 %2445 }
 0x551   : > { %v2448_v57 = vunpack.i.h.bf16 %v2446_v60  ;;  %v2447_v62 = vunpack.i.l.bf16 %v2446_v60 }
 0x552   : > { %v2466_v63 = vpop.permute.xlu1 %2465 }
 0x553   : > { %v2468_v0 = vunpack.i.h.bf16 %v2466_v63  ;;  %v2467_v1 = vunpack.i.l.bf16 %v2466_v63  ;;  %v1395_v2 = vsel %vm1349_vm1, %v2447_v62, %v2448_v57 }
 0x554   : > { %v2451_v3 = vpop.permute.xlu0 %2450  ;;  %2235 = vmatprep.mubr.f32.mxu0 %v1395_v2 }
 0x555   : > { %v2453_v4 = vunpack.i.h.bf16 %v2451_v3  ;;  %v2452_v5 = vunpack.i.l.bf16 %v2451_v3  ;;  %v1533_v6 = vsel %vm1349_vm1, %v2467_v1, %v2468_v0 }
 0x556   : > { %v2471_v7 = vpop.permute.xlu1 %2470  ;;  %2273 = vmatprep.mubr.f32.mxu1 %v1533_v6 }
 0x557   : > { %v2473_v8 = vunpack.i.h.bf16 %v2471_v7  ;;  %v2472_v9 = vunpack.i.l.bf16 %v2471_v7  ;;  %v1396_v10 = vsel %vm1349_vm1, %v2452_v5, %v2453_v4 }
 0x558   : > { %2236 = vmatmul.mubr.f32.gmra.mxu0 %v1396_v10  ;;  %v1338_v11 = vpop.permute.xlu0 %1337 }
 0x559   : > { %v1345_v12 = vrot.slane %v1338_v11, 4  ;;  %v1534_v15 = vsel %vm1349_vm1, %v2472_v9, %v2473_v8 }
 0x55a   : > { %v1340_v18 = vpop.permute.xlu1 %1339  ;;  %2274 = vmatmul.mubr.f32.gmra.mxu1 %v1534_v15 }
 0x55b   : > { %v1350_v19 = vsel %vm1349_vm1, %v1338_v11, %v1345_v12  ;;  %v1346_v20 = vrot.slane %v1340_v18, 4 }
 0x55c   : > { %1360 = vst [vmem:[%s1359_s2] sm:$0xf] %v1350_v19  ;;  %v1342_v21 = vpop.permute.xlu0 %1341 }
 0x55d   : > { %v1351_v22 = vsel %vm1349_vm1, %v1340_v18, %v1346_v20  ;;  %v1347_v23 = vrot.slane %v1342_v21, 4 }
 0x55e   : > { %1361 = vst [vmem:[%s1359_s2 + $0x8] sm:$0xf] %v1351_v22  ;;  %v1344_v58 = vpop.permute.xlu1 %1343 }
 0x55f   : > { %v1352_v13 = vsel %vm1349_vm1, %v1342_v21, %v1347_v23  ;;  %v1348_v24 = vrot.slane %v1344_v58, 4 }
 0x560   : > { %1362 = vst [vmem:[%s1359_s2 + $0x10] sm:$0xf] %v1352_v13 }
 0x561   : > { %v1353_v25 = vsel %vm1349_vm1, %v1344_v58, %v1348_v24 }
 0x562   : > { %1363 = vst [vmem:[%s1359_s2 + $0x18] sm:$0xf] %v1353_v25 }
 0x608   : > { %v2234_v27 = vpop.f32.mrf.mxu0 }
 0x609   : > { %v1487_v29 = vadd.f32 %v2234_v27, %v1365_v26 }
 0x60a   : > { %v1467_v61 = vpop.f32.mrf.mxu0  ;;  %v2272_v32 = vpop.f32.mrf.mxu1 }
 0x60b   : > { %1492 = vst.msk [vmem:[#allocation6 + $0x8] sm:$0xff] %vm1490_vm2, %v1487_v29  ;;  %v1486_v16 = vadd.f32 %v1467_v61, %v1364_v28  ;;  %v1625_v34 = vadd.f32 %v2272_v32, %v1496_v31 }
 0x60c   : > { %v1605_v35 = vpop.f32.mrf.mxu1 }
 0x60d   : > { %1491 = vst.msk [vmem:[#allocation6] sm:$0xff] %vm1490_vm2, %v1486_v16  ;;  %1629 = vst.msk [vmem:[#allocation7 + $0x8] sm:$0xff] %vm1490_vm2, %v1625_v34  ;;  %v1624_v14 = vadd.f32 %v1605_v35, %v1495_v33 }
 0x60f   : > { %1628 = vst.msk [vmem:[#allocation7] sm:$0xff] %vm1490_vm2, %v1624_v14 }
 0x618   : > { %v2237_v37 = vpop.f32.mrf.mxu0 }
 0x619   : > { %v1489_v41 = vadd.f32 %v2237_v37, %v1367_v36 }
 0x61a   : > { %v1477_v39 = vpop.f32.mrf.mxu0  ;;  %v2275_v42 = vpop.f32.mrf.mxu1 }
 0x61b   : > { %1494 = vst.msk [vmem:[#allocation6 + $0x18] sm:$0xff] %vm1490_vm2, %v1489_v41  ;;  %v1488_v30 = vadd.f32 %v1477_v39, %v1366_v38  ;;  %v1627_v43 = vadd.f32 %v2275_v42, %v1498_v40 }
 0x61c   : > { %v1615_v44 = vpop.f32.mrf.mxu1 }
 0x61d   : > { %1493 = vst.msk [vmem:[#allocation6 + $0x10] sm:$0xff] %vm1490_vm2, %v1488_v30  ;;  %1631 = vst.msk [vmem:[#allocation7 + $0x18] sm:$0xff] %vm1490_vm2, %v1627_v43  ;;  %v1626_v45 = vadd.f32 %v1615_v44, %v1497_v17 }
 0x61f   : > { %1630 = vst.msk [vmem:[#allocation7 + $0x10] sm:$0xff] %vm1490_vm2, %v1626_v45 }
 0x620 PF: > { %p2010_p1 = scmp.ne.s32.totalorder %s2583_s18, 3 }
 0x621   : > { %s2619_s1 = smov (!%p2010_p1), 0.0   ;;  %s3414_s10 = sld [smem:[#allocation26_spill]] (!%p2010_p1) }
 0x622   : > { %1635 = sbr.rel (%p2010_p1) target bundleno = 2219 (0x8ab), region = 130 }
 0x627   : > { %v1636_v47 = vld [vmem:[#allocation6] sm:$0xff]  ;;  %v1637_v48 = vld [vmem:[#allocation6 + $0x8] sm:$0xff]  ;;  %v1638_v46 = vld [vmem:[#allocation6 + $0x10] sm:$0xff]  ;;  %vm1640_vm3 = vcmask 7168   ;;  %v2618_v23 = vmov 0   ;;  %v2620_v38 = vmov 0.0  }
 0x628   : > { %v1639_v49 = vld [vmem:[#allocation6 + $0x18] sm:$0xff]  ;;  %v1641_v50 = vsel %vm1640_vm3, %v1636_v47, 0.0  ;;  %v1642_v51 = vsel %vm1640_vm3, %v1637_v48, 0.0  ;;  %v1644_v52 = vsel %vm1640_vm3, %v1638_v46, 0.0  ;;  %v1660_v53 = vld [vmem:[#allocation7] sm:$0xff]  ;;  %v1661_v54 = vld [vmem:[#allocation7 + $0x8] sm:$0xff]  ;;  %2474 = vset.pattern.permute.xlu1 %v2618_v23  ;;  %2475 = vset.pattern.permute.xlu0 %v2618_v23 }
 0x629   : > { %v1643_v55 = vadd.f32 %v1642_v51, %v1641_v50  ;;  %v1662_v56 = vld [vmem:[#allocation7 + $0x10] sm:$0xff]  ;;  %v1663_v59 = vld [vmem:[#allocation7 + $0x18] sm:$0xff]  ;;  %v1664_v60 = vsel %vm1640_vm3, %v1660_v53, 0.0  ;;  %v1665_v57 = vsel %vm1640_vm3, %v1661_v54, 0.0  ;;  %v1646_v62 = vsel %vm1640_vm3, %v1639_v49, 0.0  ;;  %v1690_v33 = vld [vmem:[%s3414_s10] sm:$0xff]  ;;  %2276 = vmatprep.subr.bf16.mxu0 %v2620_v38 }
 0x62a   : > { %v1666_v63 = vadd.f32 %v1665_v57, %v1664_v60  ;;  %v1667_v0 = vsel %vm1640_vm3, %v1662_v56, 0.0  ;;  %v1669_v3 = vsel %vm1640_vm3, %v1663_v59, 0.0  ;;  %v1692_v25 = vld [vmem:[%s3414_s10 + $0x10] sm:$0xff]  ;;  %v1693_v28 = vld [vmem:[%s3414_s10 + $0x18] sm:$0xff]  ;;  %v1691_v35 = vld [vmem:[%s3414_s10 + $0x8] sm:$0xff]  ;;  %vm2621_vm4 = vmmov 0  }
 0x62b   : > { %v1645_v1 = vadd.f32 %v1644_v52, %v1643_v55  ;;  %2280 = vmatprep.mubr.msk.bf16.mxu0 %vm2621_vm4, %v2620_v38  ;;  %vm1794_vm5 = vcmask 261120  }
 0x62c   : > { %v1668_v2 = vadd.f32 %v1667_v0, %v1666_v63 }
 0x62d   : > { %v1647_v4 = vadd.f32 %v1646_v62, %v1645_v1 }
 0x62e   : > { %v1670_v5 = vadd.f32 %v1669_v3, %v1668_v2 }
 0x62f   : > { %1648 = vadd.xlane.f32.xlu0 %v1647_v4 }
 0x633   : > { %1671 = vadd.xlane.f32.xlu0 %v1670_v5 }
 0x6b8   : > { %v1649_v6 = vpop.xlane.xlu0 %1648 }
 0x6b9   : > { %v1650_v7 = vrot.slane %v1649_v6, 4 }
 0x6bb   : > { %v1651_v8 = vadd.f32 %v1650_v7, %v1649_v6 }
 0x6bc   : > { %v1672_v9 = vpop.xlane.xlu0 %1671 }
 0x6bd   : > { %v1652_v10 = vrot.slane %v1651_v8, 2  ;;  %v1673_v11 = vrot.slane %v1672_v9, 4 }
 0x6bf   : > { %v1674_v12 = vadd.f32 %v1673_v11, %v1672_v9  ;;  %v1653_v15 = vadd.f32 %v1652_v10, %v1651_v8  ;;  %v1839_v11 = vld [vmem:[%s2856_s0] sm:$0xff] }
 0x6c1   : > { %v1675_v18 = vrot.slane %v1674_v12, 2  ;;  %v1654_v19 = vrot.slane %v1653_v15, 1 }
 0x6c3   : > { %v1655_v20 = vadd.f32 %v1654_v19, %v1653_v15  ;;  %v1676_v21 = vadd.f32 %v1675_v18, %v1674_v12 }
 0x6c5   : > { %2290 = vpush %v1655_v20  ;;  %v1677_v22 = vrot.slane %v1676_v21, 1 }
 0x6c7   : > { %v1678_v58 = vadd.f32 %v1677_v22, %v1676_v21  ;;  %v1840_v21 = vld [vmem:[%s2856_s0 + $0x8] sm:$0xff] }
 0x6c9   : > { %2292 = vpush %v1678_v58 }
 0x6f6   : > { %s2291_s3 = spop %2290 }
 0x6f7   : > { %s1659_s15 = smul.f32 0.00012207031, %s2291_s3 }
 0x6f9   : > { %s1683_s5 = smul.f32 %s1659_s15, %s1659_s15 }
 0x6fa   : > { %s2293_s22 = spop %2292 }
 0x6fb   : > { %s1682_s27 = smul.f32 0.00012207031, %s2293_s22  ;;  %s3416_s22 = sld [smem:[#allocation29_spill]] }
 0x6fd   : > { %s1684_s28 = ssub.f32 %s1682_s27, %s1683_s5 }
 0x6fe   : > { %s3415_s27 = sld [smem:[#allocation27_spill]] }
 0x6ff   : > { %s1685_s20 = smax.f32 %s2619_s1, %s1684_s28  ;;  %s3417_s1 = sld [smem:[#allocation28_spill]] }
 0x700   : > { %s1686_s13 = sadd.f32 1e-05, %s1685_s20 }
 0x701   : > { %v1777_v44 = vld [vmem:[%s3416_s22] sm:$0xff]  ;;  %v1778_v45 = vld [vmem:[%s3416_s22 + $0x8] sm:$0xff] }
 0x702   : > { %v1687_v13 = vstv %s1686_s13 }
 0x703   : > { %2477 = vrsqrt.f32 %v1687_v13 }
 0x704   : > { %v1701_v31 = vld [vmem:[%s3415_s27 + $0x10] sm:$0xff]  ;;  %v1702_v37 = vld [vmem:[%s3415_s27 + $0x18] sm:$0xff]  ;;  %v1699_v39 = vld [vmem:[%s3415_s27] sm:$0xff] }
 0x705   : > { %v1700_v30 = vld [vmem:[%s3415_s27 + $0x8] sm:$0xff]  ;;  %v2476_v8 = vld [vmem:[%s3417_s1] sm:$0xff]  }
 0x710   : > { %v2478_v24 = vpop.eup %2477 }
 0x711   : > { %2294 = vpush %v2478_v24 }
 0x742   : > { %s2295_s23 = spop %2294 }
 0x743   : > { %v1694_v26 = vstv %s2295_s23  ;;  %s1703_s24 = smul.f32 %s2295_s23, %s1659_s15  ;;  %s1713_s23 = sshra.s32 %s2847_s7, 7 }
 0x744   : > { %v1697_v27 = vmul.f32 %v1694_v26, %v1692_v25  ;;  %v1698_v32 = vmul.f32 %v1694_v26, %v1693_v28  ;;  %v1695_v34 = vmul.f32 %v1694_v26, %v1690_v33  ;;  %v1696_v36 = vmul.f32 %v1694_v26, %v1691_v35  ;;  %s2011_s15 = sshll.u32 %s1713_s23, 2 }
 0x745   : > { %v1704_v29 = vstv %s1703_s24  ;;  %s1716_s12 = scalar_lea.vmem [#allocation3], %s2011_s15 }
 0x746   : > { %v1707_v61 = vmul.f32 %v1704_v29, %v1692_v25  ;;  %1737 = vperm.xlu1 %2474, %v1697_v27   ;;  %v1708_v14 = vmul.f32 %v1704_v29, %v1693_v28  ;;  %v1705_v40 = vmul.f32 %v1704_v29, %v1690_v33  ;;  %v1706_v42 = vmul.f32 %v1704_v29, %v1691_v35  ;;  %v1719_v46 = vld [vmem:[%s1716_s12 + $0x10] ss:$8 sps:$4 sm:$0xff]   ;;  %v1717_v56 = vld [vmem:[%s1716_s12] ss:$8 sps:$4 sm:$0xff]  }
 0x747   : > { %v1723_v50 = vunpack.c.l.bf16 %v1719_v46  ;;  %v1724_v51 = vunpack.c.h.bf16 %v1719_v46  ;;  %v1721_v62 = vunpack.c.l.bf16 %v1717_v56  ;;  %v1722_v63 = vunpack.c.h.bf16 %v1717_v56 }
 0x748   : > { %v1711_v16 = vsub.f32 %v1701_v31, %v1707_v61  ;;  %v1712_v41 = vsub.f32 %v1702_v37, %v1708_v14  ;;  %v1709_v17 = vsub.f32 %v1699_v39, %v1705_v40  ;;  %v1710_v43 = vsub.f32 %v1700_v30, %v1706_v42 }
 0x74a   : > { %1761 = vperm.xlu0 %2475, %v1711_v16   ;;  %1742 = vperm.xlu1 %2474, %v1698_v32  }
 0x74e   : > { %1727 = vperm.xlu1 %2474, %v1695_v34  }
 0x752   : > { %1732 = vperm.xlu1 %2474, %v1696_v36  }
 0x756   : > { %1766 = vperm.xlu1 %2474, %v1712_v41  }
 0x75a   : > { %1751 = vperm.xlu1 %2474, %v1709_v17  }
 0x75e   : > { %1756 = vperm.xlu1 %2474, %v1710_v43  }
 0x762   : > { %1781 = vperm.xlu1 %2474, %v1777_v44  }
 0x766   : > { %1786 = vperm.xlu1 %2474, %v1778_v45  }
 0x7c1   : > { %v1738_v47 = vpop.permute.xlu1 %1737 }
 0x7c2   : > { %v1747_v54 = vmul.f32 %v1738_v47, %v1723_v50 }
 0x7c5   : > { %v1743_v48 = vpop.permute.xlu1 %1742  ;;  %v1762_v53 = vpop.permute.xlu0 %1761 }
 0x7c6   : > { %v1748_v55 = vmul.f32 %v1743_v48, %v1724_v51  ;;  %v1771_v60 = vadd.f32 %v1762_v53, %v1747_v54 }
 0x7c9   : > { %v1728_v49 = vpop.permute.xlu1 %1727 }
 0x7ca   : > { %v1745_v2 = vmul.f32 %v1728_v49, %v1721_v62 }
 0x7cd   : > { %v1733_v52 = vpop.permute.xlu1 %1732 }
 0x7ce   : > { %v1746_v3 = vmul.f32 %v1733_v52, %v1722_v63 }
 0x7d1   : > { %v1767_v59 = vpop.permute.xlu1 %1766 }
 0x7d2   : > { %v1772_v57 = vadd.f32 %v1767_v59, %v1748_v55 }
 0x7d4   : > { %v1776_v0 = vpack.c.bf16 %v1772_v57, %v1771_v60 }
 0x7d5   : > { %v1752_v1 = vpop.permute.xlu1 %1751 }
 0x7d6   : > { %2277 = vmatpush3.bf16.msra.mxu0 %v1776_v0  ;;  %v1769_v5 = vadd.f32 %v1752_v1, %v1745_v2 }
 0x7d7   : > { %2278 = vmatprep.subr.bf16.mxu0 %v2620_v38 }
 0x7d9   : > { %v1757_v4 = vpop.permute.xlu1 %1756 }
 0x7da   : > { %v1770_v6 = vadd.f32 %v1757_v4, %v1746_v3 }
 0x7dc   : > { %v1775_v7 = vpack.c.bf16 %v1770_v6, %v1769_v5 }
 0x7dd   : > { %v1782_v9 = vpop.permute.xlu1 %1781 }
 0x7de   : > { %2279 = vmatpush3.bf16.msra.mxu0 %v1775_v7 }
 0x7e1   : > { %2281 = vmatmul.mubr.msk.bf16.vlgmr.msra.gmra.mxu0 %vm1794_vm5, %v2476_v8  ;;  %v1787_v19 = vpop.permute.xlu1 %1786 }
 0x8a1   : > { %v1832_v10 = vpop.f32.mrf.mxu0 }
 0x8a2   : > { %v1833_v12 = vadd.f32 %v1832_v10, %v1782_v9 }
 0x8a3   : > { %v2282_v15 = vpop.f32.mrf.mxu0 }
 0x8a4   : > { %v1841_v18 = vadd.f32 %v1839_v11, %v1833_v12 }
 0x8a5   : > { %v1835_v20 = vpop.f32.mrf.mxu0 }
 0x8a6   : > { %1843 = vst [vmem:[%s2858_s25] sm:$0xff] %v1841_v18  ;;  %v1836_v22 = vadd.f32 %v1835_v20, %v1787_v19 }
 0x8a7   : > { %v2283_v23 = vpop.f32.mrf.mxu0 }
 0x8a8   : > { %v1842_v58 = vadd.f32 %v1840_v21, %v1836_v22 }
 0x8aa   : > { %1844 = vst [vmem:[%s2858_s25 + $0x8] sm:$0xff] %v1842_v58 }
 0x8ab PF: > { %p1853_p4 = scmp.eq.s32.totalorder %s2583_s18, 3  ;;  %s2015_s20 = sshll.u32 %s2587_s11, 2 }
 0x8ac   : > { %s1862_s13 = sshll.u32 %s2858_s25, 4  ;;  %s3418_s28 = sld [smem:[#allocation30_spill]]  ;;  %s3277_s13 = int_to_ptr.vmem [resolvable:$true] %s1862_s13 }
 0x8ad   : > { %s3443_s17 = smov (!%p1853_p4, %s2579_s17), 0  ;;  %s3419_s23 = sand.u32 1, %s2563_s30  }
 0x8ae   : > { %s1859_s0 = sadd.s32 %s2015_s20, %s3443_s17  ;;  %s3286_s15 = scalar_lea.sflag [#allocation12], %s3419_s23 }
 0x8af   : > { %s2016_s2 = sshll.u32 %s1859_s0, 7  ;;  %s2479_s12 = scalar_lea.vmem %s3277_s13, 256 }
 0x8b0   : > { %p2480_p6 = scmp.ne.s32.totalorder %s3277_s13, %s2479_s12  ;;  %s2622_s18 = smov [#allocation11]  }
 0x8b1   : > { %s2483_s11 = sshll.u32 %s2622_s18, 4  ;;  %s2484_s11 = int_to_ptr.vmem [resolvable:$false] %s2483_s11 }
 0x8b2   : > { %s3282_s4 = scalar_lea.hbm %s3418_s28, %s2016_s2  ;;  %p2481_p2 = pnand %p2480_p6, %p2816_p3 }
 0x8b3   : > { %s2485_s25 = scalar_lea.vmem %s2484_s11, 512  ;;  %p2486_p8 = scmp.lt.s32.totalorder %s3277_s13, %s2484_s11 }
 0x8b4   : > { %p2482_p7 = pneg %p2481_p2  ;;  %p2487_p9 = scmp.lt.s32.totalorder %s2485_s25, %s2479_s12 }
 0x8b6   : > { %p2488_p10 = por %p2487_p9, %p2486_p8 }
 0x8b8   : > { %p2489_p11 = pnand %p2488_p10, %p2482_p7 }
 0x8ba   : > { %2492 = shalt.err (!%p2489_p11)
}
 0x8bb   : > { %s2493_s17 = scalar_lea.hbm %s3282_s4, 256  ;;  %s2497_s1 = scalar_lea.hbm %s3418_s28, 1024 }
 0x8bc   : > { %p2494_p12 = scmp.ne.s32.totalorder %s3282_s4, %s2493_s17  ;;  %p2498_p1 = scmp.lt.s32.totalorder %s3282_s4, %s3418_s28 }
 0x8bd   : > { %p2499_p4 = scmp.lt.s32.totalorder %s2497_s1, %s2493_s17 }
 0x8be   : > { %p2495_p13 = pnand %p2494_p12, %p2816_p3 }
 0x8bf   : > { %p2500_p6 = por %p2499_p4, %p2498_p1 }
 0x8c0   : > { %p2496_p0 = pneg %p2495_p13 }
 0x8c2   : > { %p2501_p2 = pnand %p2500_p6, %p2496_p0 }
 0x8c4   : > { %2504 = shalt.err (!%p2501_p2)
}
 0x8c5   : > { %s2623_s2 = smov 128   ;;  %s2624_s3 = smov 256  }
 0x8c6   : > { %s2625_s5 = smov 8  }
 0x8c7   : > { %2296 = dma.vmem_to_hbm [thread:$0]  (%p2816_p3), %s3277_s13, 256, %s3282_s4, %s3286_s15, %s2623_s2, %s2624_s3, %s2625_s5  }
 0x8c8 PF: > { %p2302_p7 = scmp.ge.s32.totalorder %s2603_s21, 2  ;;  %s1877_s23 = sand.u32 1, %s2559_s29  }
 0x8c9   : > { %s1878_s12 = scalar_lea.sflag [#allocation12], %s1877_s23 }
 0x8ca   : > { %p2299_p8 = pnand %p2302_p7, %p2823_p5 }
 0x8cc   : > { %p2300_p9 = pneg %p2299_p8 }
 0x8ce   : > { %2554 = dma.done.wait (%p2300_p9), %s1878_s12, 256  }
 0x8cf   : > { %2556 = vsyncadd (%p2300_p9), %s1878_s12, 4294967040  ;;  %s28_s21 = sadd.s32 1, %s2603_s21   ;;  %s3420_s18 = sld [smem:[#allocation14_spill]] }
 0x8d0   : > { %p25_p10 = scmp.ge.s32.totalorder %s28_s21, 18   ;;  %s3421_s11 = sld [smem:[#allocation15_spill]] }
 0x8d1   : > { %s3422_s26 = sld [smem:[#allocation16_spill]]  ;;  %s3425_s29 = smov %s2563_s30 }
 0x8d2   : > { %s3423_s12 = sld [smem:[#allocation17_spill]]  ;;  %s3426_s30 = smov %s2567_s14 }
 0x8d3   : > { %s3424_s20 = sld [smem:[#allocation18_spill]]  ;;  %s3427_s14 = smov %s2828_s8 }
 0x8d4   : > { %s3428_s15 = smov %s2575_s16  ;;  %s3429_s16 = smov %s2811_s6 }
 0x8d5   : > { %s3430_s17 = smov %s2591_s19  ;;  %27 = sbr.rel (!%p25_p10) target bundleno = 22 (0x16), region = 178 }
 0x8d7   : > { %s3431_s19 = smov %s3422_s26 }
 0x8da   :  { %1883 = vsyncpa [#allocation12], 1 }
 0x8db   :  { %1885 = vsyncpa [#allocation12 + $0x1], 1 }

</bundles_post_ra>
